<compile_context>
chip_gen: v6e
topology: v6e:2x2x1
jax: 0.10.0
libtpu: 0.0.40
codegen_flags: <defaults>
</compile_context>

<pallas_src>
import functools
import math

import jax
import jax.numpy as jnp
from jax import lax
from jax.experimental import pallas as pl
from jax.experimental.pallas import tpu as pltpu


def _round_up(x, m):
    return (x + m - 1) // m * m


# ------------------------- Pallas kernel -------------------------

def _eq_conv_kernel(x_ref, w_ref, b_ref, o_ref, *, K, Ho, Wo, scale):
    """One (batch element, Cout tile) grid step of the equalized conv.

    x_ref: (Hp, Wp, Cin_p)   spatially pre-padded NHWC input (channels zero-padded)
    w_ref: (K*K, Cin_p, Ct)  weight taps, flattened over (kh, kw)
    b_ref: (1, Ct)           bias row (f32)
    o_ref: (Ho, Wo, Ct)      lane-dense output tile (Ct is a multiple of 128)
    """
    cin_p = x_ref.shape[-1]
    ct = o_ref.shape[-1]

    acc = jnp.zeros((Ho * Wo, ct), jnp.float32)
    # Direct conv: K*K shifted matmuls accumulated in f32 (no materialized im2col).
    for kh in range(K):
        for kw in range(K):
            xs = x_ref[pl.ds(kh, Ho), pl.ds(kw, Wo), :]          # (Ho, Wo, Cin_p)
            xs = xs.reshape(Ho * Wo, cin_p)
            wk = w_ref[kh * K + kw]                              # (Cin_p, Ct)
            acc = acc + jnp.dot(xs, wk, preferred_element_type=jnp.float32)

    # Equalized-LR scale, then bias (conv(x, w*s) + b == s*conv(x, w) + b).
    acc = acc * scale + b_ref[...]
    o_ref[...] = acc.reshape(Ho, Wo, ct).astype(o_ref.dtype)


# ------------------------- wrapper -------------------------

def equalized_conv2d(x_nchw, weight, bias=None, *, stride=1, padding=0,
                     compute_dtype=jnp.float32):
    """EqualizedConv2d.forward: x NCHW, weight (Cout, Cin, K, K), bias (Cout,) or None."""
    N, Cin, H, W = x_nchw.shape
    Cout, Cin_w, K, K2 = weight.shape
    assert Cin_w == Cin and K == K2
    scale = math.sqrt(2.0) / math.sqrt(Cin * K * K)

    cin_p = _round_up(Cin, 8)           # sublane-aligned contraction dim (zero pad: exact)
    cout_p = _round_up(Cout, 128)       # lane-dense output channels
    if cout_p <= 512:
        ct = cout_p                     # one lane-dense Cout tile
    else:
        ct = 512 if cout_p % 512 == 0 else (256 if cout_p % 256 == 0 else 128)

    Hp, Wp = H + 2 * padding, W + 2 * padding
    Ho, Wo = Hp - K + 1, Wp - K + 1     # stride-1 output; strided output subsampled below
    assert Ho > 0 and Wo > 0

    # Glue (plain JAX): NCHW -> NHWC, one combined spatial+channel zero-pad, dtype cast.
    x_nhwc = jnp.transpose(x_nchw, (0, 2, 3, 1))
    xp = jnp.pad(x_nhwc, ((0, 0), (padding, padding), (padding, padding),
                          (0, cin_p - Cin))).astype(compute_dtype)

    w_khwc = jnp.transpose(weight, (2, 3, 1, 0))                 # (K, K, Cin, Cout)
    w_p = jnp.pad(w_khwc, ((0, 0), (0, 0), (0, cin_p - Cin), (0, cout_p - Cout)))
    w_p = w_p.reshape(K * K, cin_p, cout_p).astype(compute_dtype)

    if bias is None:
        bias = jnp.zeros((Cout,), jnp.float32)
    b_p = jnp.pad(bias.astype(jnp.float32), (0, cout_p - Cout)).reshape(1, cout_p)

    kernel = functools.partial(_eq_conv_kernel, K=K, Ho=Ho, Wo=Wo, scale=scale)
    out = pl.pallas_call(
        kernel,
        out_shape=jax.ShapeDtypeStruct((N, Ho, Wo, cout_p), jnp.float32),
        grid_spec=pltpu.PrefetchScalarGridSpec(
            num_scalar_prefetch=0,
            grid=(N, cout_p // ct),
            in_specs=[
                # Whole padded image per batch element (H-band tiling with halos would
                # need manual DMA; unnecessary at these sizes).
                pl.BlockSpec((None, Hp, Wp, cin_p), lambda n, j: (n, 0, 0, 0)),
                # Weight/bias index maps are grid-invariant -> DMA'd once across the grid.
                pl.BlockSpec((K * K, cin_p, ct), lambda n, j: (0, 0, j)),
                pl.BlockSpec((1, ct), lambda n, j: (0, j)),
            ],
            out_specs=pl.BlockSpec((None, Ho, Wo, ct), lambda n, j: (n, 0, 0, j)),
        ),
        compiler_params=pltpu.CompilerParams(
            dimension_semantics=("parallel", "parallel"),
            # Explicit budget: tiny per-step footprint, safe on v5e/v6e (128 MiB) and
            # v7x (64 MiB physical, 32 MiB scoped default).
            vmem_limit_bytes=32 * 1024 * 1024),
    )(xp, w_p, b_p)

    out = out[..., :Cout]                                        # drop lane padding
    if stride > 1:
        # TODO(synk): stride>1 computes the stride-1 output and subsamples; an in-kernel
        # strided pl.ds window would avoid the wasted compute.
        out = out[:, ::stride, ::stride, :]
    return jnp.transpose(out, (0, 3, 1, 2))                      # NHWC -> NCHW


# ------------------------- plain-JAX reference -------------------------

def reference_conv2d(x, weight, bias, *, stride, padding):
    Cin, K = weight.shape[1], weight.shape[2]
    scale = math.sqrt(2.0) / math.sqrt(Cin * K * K)
    out = lax.conv_general_dilated(
        x, weight * scale, window_strides=(stride, stride),
        padding=[(padding, padding)] * 2,
        dimension_numbers=("NCHW", "OIHW", "NCHW"),
        precision=lax.Precision.HIGHEST)
    if bias is not None:
        out = out + bias.reshape(1, -1, 1, 1)
    return out


# ------------------------- main -------------------------

if __name__ == "__main__":
    # EqualizedConv2d(in_channels=4, out_channels=8, kernel_size=3, stride=1, padding=1)
    N, Cin, H, W = 2, 4, 16, 16
    Cout, K, stride, padding = 8, 3, 1, 1

    key = jax.random.PRNGKey(0)
    kx, kw, kb = jax.random.split(key, 3)
    x = jax.random.normal(kx, (N, Cin, H, W), dtype=jnp.float32)
    weight = jax.random.normal(kw, (Cout, Cin, K, K), dtype=jnp.float32)   # ~ T.randn init
    bias = 0.1 * jax.random.normal(kb, (Cout,), dtype=jnp.float32)

    out = jax.block_until_ready(
        equalized_conv2d(x, weight, bias, stride=stride, padding=padding))
    ref = jax.block_until_ready(
        reference_conv2d(x, weight, bias, stride=stride, padding=padding))

    assert out.shape == ref.shape == (N, Cout, H, W), out.shape
    err = float(jnp.max(jnp.abs(out - ref)))
    assert jnp.allclose(out, ref, rtol=1e-3, atol=1e-3), err
    print("KERNEL_OK")
</pallas_src>

<mosaic_0001>
module attributes {stable_mosaic.version = 11 : i64} {
  func.func @_eq_conv_kernel(%arg0: i32, %arg1: i32, %arg2: memref<1x18x18x8xf32, #tpu.memory_space<vmem>>, %arg3: memref<9x8x128xf32, #tpu.memory_space<vmem>>, %arg4: memref<1x128xf32, #tpu.memory_space<vmem>>, %arg5: memref<1x16x16x128xf32, #tpu.memory_space<vmem>>) attributes {dimension_semantics = [#tpu.dimension_semantics<parallel>, #tpu.dimension_semantics<parallel>], iteration_bounds = array<i64: 2, 1>, scalar_prefetch = 0 : i64, scratch_operands = 0 : i64, tpu.core_type = #tpu.core_type<tc>, window_params = [{transform_indices = @transform_0, window_bounds = array<i64: 1, 18, 18, 8>}, {transform_indices = @transform_1, window_bounds = array<i64: 9, 8, 128>}, {transform_indices = @transform_2, window_bounds = array<i64: 1, 128>}, {transform_indices = @transform_3, window_bounds = array<i64: 1, 16, 16, 128>}]} {
    %cst = arith.constant 0.000000e+00 : f32
    %0 = vector.broadcast %cst : f32 to vector<256x128xf32>
    %c0 = arith.constant 0 : index
    %c0_0 = arith.constant 0 : index
    %c0_1 = arith.constant 0 : index
    %c0_2 = arith.constant 0 : index
    %1 = vector.load %arg2[%c0, %c0_0, %c0_1, %c0_2] : memref<1x18x18x8xf32, #tpu.memory_space<vmem>>, vector<1x16x16x8xf32>
    %2 = vector.shape_cast %1 : vector<1x16x16x8xf32> to vector<16x16x8xf32>
    %3 = vector.shape_cast %2 : vector<16x16x8xf32> to vector<256x8xf32>
    %c0_3 = arith.constant 0 : index
    %c0_4 = arith.constant 0 : index
    %c0_5 = arith.constant 0 : index
    %4 = vector.load %arg3[%c0_3, %c0_4, %c0_5] : memref<9x8x128xf32, #tpu.memory_space<vmem>>, vector<1x8x128xf32>
    %5 = vector.shape_cast %4 : vector<1x8x128xf32> to vector<8x128xf32>
    %cst_6 = arith.constant dense<0.000000e+00> : vector<256x128xf32>
    %6 = tpu.matmul %3, %5, %cst_6 {dimension_numbers = #tpu.dot_dimension_numbers<[1], [0], [0], [1], [0, 0, 1, 1], [], []>} : vector<256x8xf32>, vector<8x128xf32>, vector<256x128xf32> -> vector<256x128xf32>
    %7 = arith.addf %0, %6 : vector<256x128xf32>
    %c0_7 = arith.constant 0 : index
    %c0_8 = arith.constant 0 : index
    %c1 = arith.constant 1 : index
    %c0_9 = arith.constant 0 : index
    %8 = vector.load %arg2[%c0_7, %c0_8, %c1, %c0_9] : memref<1x18x18x8xf32, #tpu.memory_space<vmem>>, vector<1x16x16x8xf32>
    %9 = vector.shape_cast %8 : vector<1x16x16x8xf32> to vector<16x16x8xf32>
    %10 = vector.shape_cast %9 : vector<16x16x8xf32> to vector<256x8xf32>
    %c1_10 = arith.constant 1 : index
    %c0_11 = arith.constant 0 : index
    %c0_12 = arith.constant 0 : index
    %11 = vector.load %arg3[%c1_10, %c0_11, %c0_12] : memref<9x8x128xf32, #tpu.memory_space<vmem>>, vector<1x8x128xf32>
    %12 = vector.shape_cast %11 : vector<1x8x128xf32> to vector<8x128xf32>
    %cst_13 = arith.constant dense<0.000000e+00> : vector<256x128xf32>
    %13 = tpu.matmul %10, %12, %cst_13 {dimension_numbers = #tpu.dot_dimension_numbers<[1], [0], [0], [1], [0, 0, 1, 1], [], []>} : vector<256x8xf32>, vector<8x128xf32>, vector<256x128xf32> -> vector<256x128xf32>
    %14 = arith.addf %7, %13 : vector<256x128xf32>
    %c0_14 = arith.constant 0 : index
    %c0_15 = arith.constant 0 : index
    %c2 = arith.constant 2 : index
    %c0_16 = arith.constant 0 : index
    %15 = vector.load %arg2[%c0_14, %c0_15, %c2, %c0_16] : memref<1x18x18x8xf32, #tpu.memory_space<vmem>>, vector<1x16x16x8xf32>
    %16 = vector.shape_cast %15 : vector<1x16x16x8xf32> to vector<16x16x8xf32>
    %17 = vector.shape_cast %16 : vector<16x16x8xf32> to vector<256x8xf32>
    %c2_17 = arith.constant 2 : index
    %c0_18 = arith.constant 0 : index
    %c0_19 = arith.constant 0 : index
    %18 = vector.load %arg3[%c2_17, %c0_18, %c0_19] : memref<9x8x128xf32, #tpu.memory_space<vmem>>, vector<1x8x128xf32>
    %19 = vector.shape_cast %18 : vector<1x8x128xf32> to vector<8x128xf32>
    %cst_20 = arith.constant dense<0.000000e+00> : vector<256x128xf32>
    %20 = tpu.matmul %17, %19, %cst_20 {dimension_numbers = #tpu.dot_dimension_numbers<[1], [0], [0], [1], [0, 0, 1, 1], [], []>} : vector<256x8xf32>, vector<8x128xf32>, vector<256x128xf32> -> vector<256x128xf32>
    %21 = arith.addf %14, %20 : vector<256x128xf32>
    %c0_21 = arith.constant 0 : index
    %c1_22 = arith.constant 1 : index
    %c0_23 = arith.constant 0 : index
    %c0_24 = arith.constant 0 : index
    %22 = vector.load %arg2[%c0_21, %c1_22, %c0_23, %c0_24] : memref<1x18x18x8xf32, #tpu.memory_space<vmem>>, vector<1x16x16x8xf32>
    %23 = vector.shape_cast %22 : vector<1x16x16x8xf32> to vector<16x16x8xf32>
    %24 = vector.shape_cast %23 : vector<16x16x8xf32> to vector<256x8xf32>
    %c3 = arith.constant 3 : index
    %c0_25 = arith.constant 0 : index
    %c0_26 = arith.constant 0 : index
    %25 = vector.load %arg3[%c3, %c0_25, %c0_26] : memref<9x8x128xf32, #tpu.memory_space<vmem>>, vector<1x8x128xf32>
    %26 = vector.shape_cast %25 : vector<1x8x128xf32> to vector<8x128xf32>
    %cst_27 = arith.constant dense<0.000000e+00> : vector<256x128xf32>
    %27 = tpu.matmul %24, %26, %cst_27 {dimension_numbers = #tpu.dot_dimension_numbers<[1], [0], [0], [1], [0, 0, 1, 1], [], []>} : vector<256x8xf32>, vector<8x128xf32>, vector<256x128xf32> -> vector<256x128xf32>
    %28 = arith.addf %21, %27 : vector<256x128xf32>
    %c0_28 = arith.constant 0 : index
    %c1_29 = arith.constant 1 : index
    %c1_30 = arith.constant 1 : index
    %c0_31 = arith.constant 0 : index
    %29 = vector.load %arg2[%c0_28, %c1_29, %c1_30, %c0_31] : memref<1x18x18x8xf32, #tpu.memory_space<vmem>>, vector<1x16x16x8xf32>
    %30 = vector.shape_cast %29 : vector<1x16x16x8xf32> to vector<16x16x8xf32>
    %31 = vector.shape_cast %30 : vector<16x16x8xf32> to vector<256x8xf32>
    %c4 = arith.constant 4 : index
    %c0_32 = arith.constant 0 : index
    %c0_33 = arith.constant 0 : index
    %32 = vector.load %arg3[%c4, %c0_32, %c0_33] : memref<9x8x128xf32, #tpu.memory_space<vmem>>, vector<1x8x128xf32>
    %33 = vector.shape_cast %32 : vector<1x8x128xf32> to vector<8x128xf32>
    %cst_34 = arith.constant dense<0.000000e+00> : vector<256x128xf32>
    %34 = tpu.matmul %31, %33, %cst_34 {dimension_numbers = #tpu.dot_dimension_numbers<[1], [0], [0], [1], [0, 0, 1, 1], [], []>} : vector<256x8xf32>, vector<8x128xf32>, vector<256x128xf32> -> vector<256x128xf32>
    %35 = arith.addf %28, %34 : vector<256x128xf32>
    %c0_35 = arith.constant 0 : index
    %c1_36 = arith.constant 1 : index
    %c2_37 = arith.constant 2 : index
    %c0_38 = arith.constant 0 : index
    %36 = vector.load %arg2[%c0_35, %c1_36, %c2_37, %c0_38] : memref<1x18x18x8xf32, #tpu.memory_space<vmem>>, vector<1x16x16x8xf32>
    %37 = vector.shape_cast %36 : vector<1x16x16x8xf32> to vector<16x16x8xf32>
    %38 = vector.shape_cast %37 : vector<16x16x8xf32> to vector<256x8xf32>
    %c5 = arith.constant 5 : index
    %c0_39 = arith.constant 0 : index
    %c0_40 = arith.constant 0 : index
    %39 = vector.load %arg3[%c5, %c0_39, %c0_40] : memref<9x8x128xf32, #tpu.memory_space<vmem>>, vector<1x8x128xf32>
    %40 = vector.shape_cast %39 : vector<1x8x128xf32> to vector<8x128xf32>
    %cst_41 = arith.constant dense<0.000000e+00> : vector<256x128xf32>
    %41 = tpu.matmul %38, %40, %cst_41 {dimension_numbers = #tpu.dot_dimension_numbers<[1], [0], [0], [1], [0, 0, 1, 1], [], []>} : vector<256x8xf32>, vector<8x128xf32>, vector<256x128xf32> -> vector<256x128xf32>
    %42 = arith.addf %35, %41 : vector<256x128xf32>
    %c0_42 = arith.constant 0 : index
    %c2_43 = arith.constant 2 : index
    %c0_44 = arith.constant 0 : index
    %c0_45 = arith.constant 0 : index
    %43 = vector.load %arg2[%c0_42, %c2_43, %c0_44, %c0_45] : memref<1x18x18x8xf32, #tpu.memory_space<vmem>>, vector<1x16x16x8xf32>
    %44 = vector.shape_cast %43 : vector<1x16x16x8xf32> to vector<16x16x8xf32>
    %45 = vector.shape_cast %44 : vector<16x16x8xf32> to vector<256x8xf32>
    %c6 = arith.constant 6 : index
    %c0_46 = arith.constant 0 : index
    %c0_47 = arith.constant 0 : index
    %46 = vector.load %arg3[%c6, %c0_46, %c0_47] : memref<9x8x128xf32, #tpu.memory_space<vmem>>, vector<1x8x128xf32>
    %47 = vector.shape_cast %46 : vector<1x8x128xf32> to vector<8x128xf32>
    %cst_48 = arith.constant dense<0.000000e+00> : vector<256x128xf32>
    %48 = tpu.matmul %45, %47, %cst_48 {dimension_numbers = #tpu.dot_dimension_numbers<[1], [0], [0], [1], [0, 0, 1, 1], [], []>} : vector<256x8xf32>, vector<8x128xf32>, vector<256x128xf32> -> vector<256x128xf32>
    %49 = arith.addf %42, %48 : vector<256x128xf32>
    %c0_49 = arith.constant 0 : index
    %c2_50 = arith.constant 2 : index
    %c1_51 = arith.constant 1 : index
    %c0_52 = arith.constant 0 : index
    %50 = vector.load %arg2[%c0_49, %c2_50, %c1_51, %c0_52] : memref<1x18x18x8xf32, #tpu.memory_space<vmem>>, vector<1x16x16x8xf32>
    %51 = vector.shape_cast %50 : vector<1x16x16x8xf32> to vector<16x16x8xf32>
    %52 = vector.shape_cast %51 : vector<16x16x8xf32> to vector<256x8xf32>
    %c7 = arith.constant 7 : index
    %c0_53 = arith.constant 0 : index
    %c0_54 = arith.constant 0 : index
    %53 = vector.load %arg3[%c7, %c0_53, %c0_54] : memref<9x8x128xf32, #tpu.memory_space<vmem>>, vector<1x8x128xf32>
    %54 = vector.shape_cast %53 : vector<1x8x128xf32> to vector<8x128xf32>
    %cst_55 = arith.constant dense<0.000000e+00> : vector<256x128xf32>
    %55 = tpu.matmul %52, %54, %cst_55 {dimension_numbers = #tpu.dot_dimension_numbers<[1], [0], [0], [1], [0, 0, 1, 1], [], []>} : vector<256x8xf32>, vector<8x128xf32>, vector<256x128xf32> -> vector<256x128xf32>
    %56 = arith.addf %49, %55 : vector<256x128xf32>
    %c0_56 = arith.constant 0 : index
    %c2_57 = arith.constant 2 : index
    %c2_58 = arith.constant 2 : index
    %c0_59 = arith.constant 0 : index
    %57 = vector.load %arg2[%c0_56, %c2_57, %c2_58, %c0_59] : memref<1x18x18x8xf32, #tpu.memory_space<vmem>>, vector<1x16x16x8xf32>
    %58 = vector.shape_cast %57 : vector<1x16x16x8xf32> to vector<16x16x8xf32>
    %59 = vector.shape_cast %58 : vector<16x16x8xf32> to vector<256x8xf32>
    %c8 = arith.constant 8 : index
    %c0_60 = arith.constant 0 : index
    %c0_61 = arith.constant 0 : index
    %60 = vector.load %arg3[%c8, %c0_60, %c0_61] : memref<9x8x128xf32, #tpu.memory_space<vmem>>, vector<1x8x128xf32>
    %61 = vector.shape_cast %60 : vector<1x8x128xf32> to vector<8x128xf32>
    %cst_62 = arith.constant dense<0.000000e+00> : vector<256x128xf32>
    %62 = tpu.matmul %59, %61, %cst_62 {dimension_numbers = #tpu.dot_dimension_numbers<[1], [0], [0], [1], [0, 0, 1, 1], [], []>} : vector<256x8xf32>, vector<8x128xf32>, vector<256x128xf32> -> vector<256x128xf32>
    %63 = arith.addf %56, %62 : vector<256x128xf32>
    %cst_63 = arith.constant 0.235702261 : f32
    %64 = vector.broadcast %cst_63 : f32 to vector<256x128xf32>
    %65 = arith.mulf %63, %64 : vector<256x128xf32>
    %c0_64 = arith.constant 0 : index
    %c0_65 = arith.constant 0 : index
    %66 = vector.load %arg4[%c0_64, %c0_65] : memref<1x128xf32, #tpu.memory_space<vmem>>, vector<1x128xf32>
    %67 = vector.broadcast %66 : vector<1x128xf32> to vector<256x128xf32>
    %68 = arith.addf %65, %67 : vector<256x128xf32>
    %69 = vector.shape_cast %68 : vector<256x128xf32> to vector<16x16x128xf32>
    %c0_66 = arith.constant 0 : index
    %c0_67 = arith.constant 0 : index
    %c0_68 = arith.constant 0 : index
    %c0_69 = arith.constant 0 : index
    %70 = vector.load %arg5[%c0_66, %c0_67, %c0_68, %c0_69] : memref<1x16x16x128xf32, #tpu.memory_space<vmem>>, vector<1x16x16x128xf32>
    %71 = vector.shape_cast %70 : vector<1x16x16x128xf32> to vector<16x16x128xf32>
    %72 = vector.shape_cast %69 : vector<16x16x128xf32> to vector<1x16x16x128xf32>
    tpu.vector_store %arg5[%c0_66, %c0_67, %c0_68, %c0_69], %72 {strides = array<i32>} : memref<1x16x16x128xf32, #tpu.memory_space<vmem>>, vector<1x16x16x128xf32>,
    return
  }
  func.func @transform_0(%arg0: i32, %arg1: i32) -> (i32, i32, i32, i32) {
    %c0_i32 = arith.constant 0 : i32
    %c0_i32_0 = arith.constant 0 : i32
    %c0_i32_1 = arith.constant 0 : i32
    %c0_i32_2 = arith.constant 0 : i32
    return %arg0, %c0_i32, %c0_i32_0, %c0_i32_1 : i32, i32, i32, i32
  }
  func.func @transform_1(%arg0: i32, %arg1: i32) -> (i32, i32, i32) {
    %c0_i32 = arith.constant 0 : i32
    %c0_i32_0 = arith.constant 0 : i32
    %c0_i32_1 = arith.constant 0 : i32
    return %c0_i32, %c0_i32_0, %arg1 : i32, i32, i32
  }
  func.func @transform_2(%arg0: i32, %arg1: i32) -> (i32, i32) {
    %c0_i32 = arith.constant 0 : i32
    %c0_i32_0 = arith.constant 0 : i32
    return %c0_i32, %arg1 : i32, i32
  }
  func.func @transform_3(%arg0: i32, %arg1: i32) -> (i32, i32, i32, i32) {
    %c0_i32 = arith.constant 0 : i32
    %c0_i32_0 = arith.constant 0 : i32
    %c0_i32_1 = arith.constant 0 : i32
    return %arg0, %c0_i32, %c0_i32_0, %arg1 : i32, i32, i32, i32
  }
}

</mosaic_0001>

<bundles_post_ra>
// kernel: tpu_custom_call.1
= control target key start
LH: loop header
LB: loop body
LE: loop exit
PB: predicated region body
PF: predicated region fallthrough
CT: control target
= control target key end

     0   :  { %8 = vsyncpa [#allocation3], 0  ;;  %s6845_s0 = inlined_call_operand.vmem [shape: f32[2,18,18,8], index: 0, kind: input, shape index: {}]   ;;  %s6846_s1 = inlined_call_operand.vmem [shape: f32[9,8,128], index: 1, kind: input, shape index: {}]   ;;  %s6847_s2 = inlined_call_operand.vmem [shape: f32[1,128], index: 2, kind: input, shape index: {}]   ;;  %s6848_s3 = inlined_call_operand.hbm [shape: f32[2,16,16,128], index: 3, kind: output, shape index: {}]  }
   0x1   :  { %10 = vsyncpa [#allocation3 + $0x1], 0  ;;  %s5264_s12 = smov 0   ;;  %s5266_s13 = smov 0  }
   0x2   :  { %s5268_s14 = smov 0   ;;  %s5270_s15 = smov 0  }
   0x3   :  { %s5272_s16 = smov 0   ;;  %s5274_s17 = smov 0  }
   0x4 LB: > { %s3852_s18 = sadd.s32 4294967295, %s5239_s17   ;;  %s3853_s19 = sadd.s32 4294967294, %s5239_s17   ;;  %s5239_s17 = sphi %s5274_s17, %s16_s17   ;;  %s5235_s16 = sphi %s5272_s16, %s7083_s16   ;;  %s5231_s15 = sphi %s5270_s15, %s7082_s15   ;;  %s5227_s14 = sphi %s5268_s14, %s7081_s14   ;;  %s5223_s13 = sphi %s5266_s13, %s7080_s13   ;;  %s5219_s12 = sphi %s5264_s12, %s7079_s12  }
   0x5   : > { %s28_s20 = sadd.s32 1, %s5235_s16  ;;  %s115_s21 = sadd.s32 1, %s5227_s14 }
   0x6   : > { %p30_p0 = scmp.ge.s32.totalorder %s28_s20, 2  ;;  %p125_p1 = scmp.ne.s32.totalorder %s5227_s14, %s5223_s13 }
   0x7   : > { %p126_p2 = scmp.eq.s32.totalorder %s3852_s18, 1  ;;  %p131_p3 = scmp.ne.s32.totalorder %s5223_s13, %s5219_s12 }
   0x8   : > { %s7085_s20 = smov (%p30_p0, %s28_s20), 0  ;;  %p132_p5 = scmp.eq.s32.totalorder %s3853_s19, 1 }
   0x9   : > { %p5304_p4 = por %p126_p2, %p125_p1  ;;  %s110_s23 = ssub.s32 %s5235_s16, %s7085_s20 }
   0xa   : > { %p3858_p6 = scmp.ge.s32.totalorder %s5239_s17, 1  ;;  %p113_p7 = scmp.eq.s32.totalorder %s110_s23, 0 }
   0xb   : > { %p5311_p8 = por %p132_p5, %p131_p3  ;;  %p171_p9 = scmp.lt.s32.totalorder %s5239_s17, 3 }
   0xc   : > { %s5317_s25 = scalar_select %p113_p7, %s5227_s14, %s115_s21  }
   0xd   : > { %p172_p10 = pnand %p3858_p6, %p171_p9 }
   0xf   : > { %175 = sbr.rel (%p172_p10) target bundleno = 531 (0x213), region = 32 }
  0x14   : > { %v3861_v0 = vld [vmem:[%s6846_s1 + $0x8] sm:$0xff]  ;;  %p202_p11 = scmp.lt.s32.totalorder %s5231_s15, 1  ;;  %v246_v1 = vld [vmem:[%s6846_s1] sm:$0xff]  ;;  %v3926_v2 = vld [vmem:[%s6846_s1 + $0x10] sm:$0xff]  ;;  %vm281_vm0 = vcmask 64512   ;;  %s4355_s10 = sshll.u32 %s5231_s15, 12 }
  0x15   : > { %5103 = vmatprep.subr.mxu1 %v3861_v0  ;;  %4653 = vmatprep.subr.mxu0 %v3861_v0  ;;  %v5358_v9 = vld [vmem:[%s6846_s1 + $0x18] sm:$0xff]  ;;  %v5363_v10 = vld [vmem:[%s6846_s1 + $0x20] sm:$0xff]  ;;  %v5518_v43 = vld [vmem:[%s6846_s1 + $0x28] sm:$0xff]  ;;  %s6791_s21 = scalar_lea.hbm %s6848_s3, %s4355_s10  ;;  %s5241_s26 = smov [#allocation2]  }
  0x16   : > { %5104 = vmatpush3.msra.mxu1 %v3861_v0  ;;  %4654 = vmatpush3.msra.mxu0 %v3861_v0  ;;  %s203_s5 = scalar_select %p202_p11, %s5231_s15, 1  ;;  %v5523_v44 = vld [vmem:[%s6846_s1 + $0x30] sm:$0xff] }
  0x17   : > { %4703 = vmatprep.subr.mxu1 %v246_v1  ;;  %4753 = vmatprep.subr.mxu0 %v3926_v2  ;;  %s5167_s27 = sshll.u32 %s5241_s26, 4  ;;  %s5168_s27 = int_to_ptr.vmem [resolvable:$false] %s5167_s27 }
  0x18   : > { %s5105_s6 = smul.u32 432, %s203_s5  ;;  %s199_s5 = sand.u32 1, %s5223_s13  }
  0x19   : > { %s6800_s15 = scalar_lea.sflag [#allocation3], %s199_s5  ;;  %s5169_s28 = scalar_lea.vmem %s5168_s27, 8192 }
  0x1a   : > { %s5333_s9 = scalar_lea.vmem %s6845_s0, %s5105_s6  ;;  %s3859_s6 = sshll.u32 %s199_s5, 8 }
  0x1b   : > { %v247_v3 = vld [vmem:[%s5333_s9 + $0x1] sm:$0xff]  ;;  %v248_v5 = vld [vmem:[%s5333_s9 + $0x9] sm:$0xff]  ;;  %v5347_v7 = vld [vmem:[%s5333_s9 + $0x19] sm:$0xff] }
  0x1c   : > { %v5337_v4 = vld [vmem:[%s5333_s9 + $0xc1] sm:$0xff]  ;;  %4655 = vmatprep.mubr.msk.f32.mxu0 %vm281_vm0, %v247_v3  ;;  %v5344_v6 = vld [vmem:[%s5333_s9 + $0xc9] sm:$0xff]  ;;  %v5350_v8 = vld [vmem:[%s5333_s9 + $0xd9] sm:$0xff] }
  0x1d   : > { %4679 = vmatprep.mubr.msk.f32.mxu1 %vm281_vm0, %v5337_v4  ;;  %4656 = vmatmul.mubr.msk.f32.vlgmr.msra.gmra.mxu0 %vm281_vm0, %v248_v5  ;;  %v5366_v11 = vld [vmem:[%s5333_s9 + $0x21] sm:$0xff]  ;;  %v5376_v13 = vld [vmem:[%s5333_s9 + $0x31] sm:$0xff]  ;;  %v5392_v15 = vld [vmem:[%s5333_s9 + $0x39] sm:$0xff] }
  0x1e   : > { %4680 = vmatmul.mubr.msk.f32.vlgmr.msra.gmra.mxu1 %vm281_vm0, %v5344_v6  ;;  %4754 = vmatpush3.msra.mxu0 %v3926_v2  ;;  %v5369_v12 = vld [vmem:[%s5333_s9 + $0xe1] sm:$0xff]  ;;  %v5379_v14 = vld [vmem:[%s5333_s9 + $0xf1] sm:$0xff]  ;;  %v5395_v16 = vld [vmem:[%s5333_s9 + $0xf9] sm:$0xff] }
  0x1f   : > { %4704 = vmatpush3.msra.mxu1 %v246_v1  ;;  %4658 = vmatprep.mubr.msk.f32.mxu0 %vm281_vm0, %v5347_v7  ;;  %v5398_v17 = vld [vmem:[%s5333_s9 + $0x49] sm:$0xff]  ;;  %v5412_v19 = vld [vmem:[%s5333_s9 + $0x51] sm:$0xff]  ;;  %v5418_v21 = vld [vmem:[%s5333_s9 + $0x61] sm:$0xff] }
  0x20   : > { %4682 = vmatprep.mubr.msk.f32.mxu1 %vm281_vm0, %v5350_v8  ;;  %4803 = vmatprep.subr.mxu1 %v5358_v9  ;;  %v5401_v18 = vld [vmem:[%s5333_s9 + $0x109] sm:$0xff]  ;;  %v5415_v20 = vld [vmem:[%s5333_s9 + $0x111] sm:$0xff]  ;;  %v5421_v22 = vld [vmem:[%s5333_s9 + $0x121] sm:$0xff] }
  0x21   : > { %4853 = vmatprep.subr.mxu0 %v5363_v10  ;;  %4659 = vmatmul.mubr.msk.f32.gmra.mxu0 %vm281_vm0, %v5366_v11  ;;  %v5432_v23 = vld [vmem:[%s5333_s9 + $0x69] sm:$0xff]  ;;  %v5438_v25 = vld [vmem:[%s5333_s9 + $0x79] sm:$0xff]  ;;  %v5452_v27 = vld [vmem:[%s5333_s9 + $0x81] sm:$0xff] }
  0x22   : > { %4683 = vmatmul.mubr.msk.f32.gmra.mxu1 %vm281_vm0, %v5369_v12  ;;  %4661 = vmatprep.mubr.msk.f32.mxu0 %vm281_vm0, %v5376_v13  ;;  %v5435_v24 = vld [vmem:[%s5333_s9 + $0x129] sm:$0xff]  ;;  %v5441_v26 = vld [vmem:[%s5333_s9 + $0x139] sm:$0xff]  ;;  %v5455_v28 = vld [vmem:[%s5333_s9 + $0x141] sm:$0xff] }
  0x23   : > { %4685 = vmatprep.mubr.msk.f32.mxu1 %vm281_vm0, %v5379_v14  ;;  %v5458_v29 = vld [vmem:[%s5333_s9 + $0x91] sm:$0xff]  ;;  %v5472_v31 = vld [vmem:[%s5333_s9 + $0x99] sm:$0xff]  ;;  %v5478_v33 = vld [vmem:[%s5333_s9 + $0xa9] sm:$0xff] }
  0x24   : > { %v5461_v30 = vld [vmem:[%s5333_s9 + $0x151] sm:$0xff]  ;;  %v5475_v32 = vld [vmem:[%s5333_s9 + $0x159] sm:$0xff]  ;;  %v5481_v34 = vld [vmem:[%s5333_s9 + $0x169] sm:$0xff] }
  0x25   : > { %4662 = vmatmul.mubr.msk.f32.gmra.mxu0 %vm281_vm0, %v5392_v15  ;;  %v5492_v35 = vld [vmem:[%s5333_s9 + $0xb1] sm:$0xff]  ;;  %v214_v37 = vld [vmem:[%s5333_s9] sm:$0xff]  ;;  %v215_v39 = vld [vmem:[%s5333_s9 + $0x8] sm:$0xff] }
  0x26   : > { %4686 = vmatmul.mubr.msk.f32.gmra.mxu1 %vm281_vm0, %v5395_v16  ;;  %4664 = vmatprep.mubr.msk.f32.mxu0 %vm281_vm0, %v5398_v17  ;;  %v5495_v36 = vld [vmem:[%s5333_s9 + $0x171] sm:$0xff]  ;;  %v924_v38 = vld [vmem:[%s5333_s9 + $0x2] sm:$0xff]  ;;  %v5511_v42 = vld [vmem:[%s5333_s9 + $0x1a] sm:$0xff] }
  0x27   : > { %4688 = vmatprep.mubr.msk.f32.mxu1 %vm281_vm0, %v5401_v18  ;;  %6911 = vst [vmem:[#allocation5_spill] sm:$0xff] %v5495_v36  ;;  %v925_v40 = vld [vmem:[%s5333_s9 + $0xa] sm:$0xff]  ;;  %v5508_v41 = vld [vmem:[%s5333_s9 + $0x18] sm:$0xff]  ;;  %6912 = vst [vmem:[#allocation6_spill] sm:$0xff] %v5511_v42 }
  0x28   : > { %v5528_v45 = vld [vmem:[%s5333_s9 + $0x20] sm:$0xff]  ;;  %v5538_v47 = vld [vmem:[%s5333_s9 + $0x30] sm:$0xff]  ;;  %v5554_v49 = vld [vmem:[%s5333_s9 + $0x38] sm:$0xff] }
  0x29   : > { %4665 = vmatmul.mubr.msk.f32.gmra.mxu0 %vm281_vm0, %v5412_v19  ;;  %v5531_v46 = vld [vmem:[%s5333_s9 + $0x22] sm:$0xff]  ;;  %v5541_v48 = vld [vmem:[%s5333_s9 + $0x32] sm:$0xff]  ;;  %v5557_v50 = vld [vmem:[%s5333_s9 + $0x3a] sm:$0xff] }
  0x2a   : > { %4689 = vmatmul.mubr.msk.f32.gmra.mxu1 %vm281_vm0, %v5415_v20  ;;  %4667 = vmatprep.mubr.msk.f32.mxu0 %vm281_vm0, %v5418_v21  ;;  %6913 = vst [vmem:[#allocation7_spill] sm:$0xff] %v5531_v46  ;;  %6914 = vst [vmem:[#allocation8_spill] sm:$0xff] %v5541_v48  ;;  %v5560_v51 = vld [vmem:[%s5333_s9 + $0x48] sm:$0xff]  ;;  %v5574_v53 = vld [vmem:[%s5333_s9 + $0x50] sm:$0xff] }
  0x2b   : > { %4691 = vmatprep.mubr.msk.f32.mxu1 %vm281_vm0, %v5421_v22  ;;  %6915 = vst [vmem:[#allocation9_spill] sm:$0xff] %v5557_v50  ;;  %v5563_v52 = vld [vmem:[%s5333_s9 + $0x4a] sm:$0xff]  ;;  %v5577_v54 = vld [vmem:[%s5333_s9 + $0x52] sm:$0xff]  ;;  %v5580_v55 = vld [vmem:[%s5333_s9 + $0x60] sm:$0xff] }
  0x2c   : > { %6916 = vst [vmem:[#allocation10_spill] sm:$0xff] %v5563_v52  ;;  %6917 = vst [vmem:[#allocation11_spill] sm:$0xff] %v5577_v54  ;;  %v5583_v56 = vld [vmem:[%s5333_s9 + $0x62] sm:$0xff]  ;;  %v5597_v58 = vld [vmem:[%s5333_s9 + $0x6a] sm:$0xff] }
  0x2d   : > { %4668 = vmatmul.mubr.msk.f32.gmra.mxu0 %vm281_vm0, %v5432_v23  ;;  %6918 = vst [vmem:[#allocation12_spill] sm:$0xff] %v5583_v56  ;;  %v5594_v57 = vld [vmem:[%s5333_s9 + $0x68] sm:$0xff]  ;;  %6919 = vst [vmem:[#allocation13_spill] sm:$0xff] %v5597_v58  ;;  %v5600_v59 = vld [vmem:[%s5333_s9 + $0x78] sm:$0xff] }
  0x2e   : > { %4692 = vmatmul.mubr.msk.f32.gmra.mxu1 %vm281_vm0, %v5435_v24  ;;  %4670 = vmatprep.mubr.msk.f32.mxu0 %vm281_vm0, %v5438_v25  ;;  %v5603_v60 = vld [vmem:[%s5333_s9 + $0x7a] sm:$0xff]  ;;  %v5617_v62 = vld [vmem:[%s5333_s9 + $0x82] sm:$0xff]  ;;  %v5620_v63 = vld [vmem:[%s5333_s9 + $0x90] sm:$0xff] }
  0x2f   : > { %4694 = vmatprep.mubr.msk.f32.mxu1 %vm281_vm0, %v5441_v26  ;;  %6920 = vst [vmem:[#allocation14_spill] sm:$0xff] %v5603_v60  ;;  %v5614_v61 = vld [vmem:[%s5333_s9 + $0x80] sm:$0xff]  ;;  %6921 = vst [vmem:[#allocation15_spill] sm:$0xff] %v5617_v62  ;;  %v5623_v0 = vld [vmem:[%s5333_s9 + $0x92] sm:$0xff] }
  0x30   : > { %6922 = vst [vmem:[#allocation16_spill] sm:$0xff] %v5623_v0  ;;  %v5634_v1 = vld [vmem:[%s5333_s9 + $0x98] sm:$0xff]  ;;  %v5640_v3 = vld [vmem:[%s5333_s9 + $0xa8] sm:$0xff] }
  0x31   : > { %4671 = vmatmul.mubr.msk.f32.gmra.mxu0 %vm281_vm0, %v5452_v27  ;;  %v5637_v2 = vld [vmem:[%s5333_s9 + $0x9a] sm:$0xff]  ;;  %v5643_v5 = vld [vmem:[%s5333_s9 + $0xaa] sm:$0xff] }
  0x32   : > { %4695 = vmatmul.mubr.msk.f32.gmra.mxu1 %vm281_vm0, %v5455_v28  ;;  %4673 = vmatprep.mubr.msk.f32.mxu0 %vm281_vm0, %v5458_v29  ;;  %6923 = vst [vmem:[#allocation17_spill] sm:$0xff] %v5637_v2  ;;  %6924 = vst [vmem:[#allocation18_spill] sm:$0xff] %v5643_v5 }
  0x33   : > { %4697 = vmatprep.mubr.msk.f32.mxu1 %vm281_vm0, %v5461_v30 }
  0x35   : > { %4674 = vmatmul.mubr.msk.f32.gmra.mxu0 %vm281_vm0, %v5472_v31 }
  0x36   : > { %4698 = vmatmul.mubr.msk.f32.gmra.mxu1 %vm281_vm0, %v5475_v32  ;;  %4676 = vmatprep.mubr.msk.f32.mxu0 %vm281_vm0, %v5478_v33 }
  0x37   : > { %4700 = vmatprep.mubr.msk.f32.mxu1 %vm281_vm0, %v5481_v34 }
  0x39   : > { %4677 = vmatmul.mubr.msk.f32.gmra.mxu0 %vm281_vm0, %v5492_v35 }
  0x3a   : > { %4701 = vmatmul.mubr.msk.f32.gmra.mxu1 %vm281_vm0, %v5495_v36  ;;  %4755 = vmatprep.mubr.msk.f32.mxu0 %vm281_vm0, %v924_v38  ;;  %v5663_v38 = vld [vmem:[%s5333_s9 + $0xc2] sm:$0xff]  ;;  %v5803_v36 = vld [vmem:[%s5333_s9 + $0x16a] sm:$0xff] }
  0x3b   : > { %4705 = vmatprep.mubr.msk.f32.mxu1 %vm281_vm0, %v214_v37  ;;  %v5660_v37 = vld [vmem:[%s5333_s9 + $0xc0] sm:$0xff]  ;;  %6926 = vst [vmem:[#allocation20_spill] sm:$0xff] %v5663_v38  ;;  %6940 = vst [vmem:[#allocation34_spill] sm:$0xff] %v5803_v36 }
  0x3d   : > { %4756 = vmatmul.mubr.msk.f32.vlgmr.msra.gmra.mxu0 %vm281_vm0, %v925_v40  ;;  %v5677_v40 = vld [vmem:[%s5333_s9 + $0xca] sm:$0xff] }
  0x3e   : > { %4706 = vmatmul.mubr.msk.f32.vlgmr.msra.gmra.mxu1 %vm281_vm0, %v215_v39  ;;  %4854 = vmatpush3.msra.mxu0 %v5363_v10  ;;  %v5657_v10 = vld [vmem:[%s5333_s9 + $0xb2] sm:$0xff]  ;;  %v5674_v39 = vld [vmem:[%s5333_s9 + $0xc8] sm:$0xff]  ;;  %6927 = vst [vmem:[#allocation21_spill] sm:$0xff] %v5677_v40 }
  0x3f   : > { %4804 = vmatpush3.msra.mxu1 %v5358_v9  ;;  %4708 = vmatprep.mubr.msk.f32.mxu1 %vm281_vm0, %v5508_v41  ;;  %v5654_v9 = vld [vmem:[%s5333_s9 + $0xb0] sm:$0xff]  ;;  %6925 = vst [vmem:[#allocation19_spill] sm:$0xff] %v5657_v10 }
  0x40   : > { %4758 = vmatprep.mubr.msk.f32.mxu0 %vm281_vm0, %v5511_v42  ;;  %4903 = vmatprep.subr.mxu1 %v5518_v43  ;;  %v5800_v42 = vld [vmem:[%s5333_s9 + $0x168] sm:$0xff] }
  0x41   : > { %4953 = vmatprep.subr.mxu0 %v5523_v44  ;;  %4759 = vmatmul.mubr.msk.f32.gmra.mxu0 %vm281_vm0, %v5531_v46  ;;  %v5783_v46 = vld [vmem:[%s5333_s9 + $0x152] sm:$0xff] }
  0x42   : > { %4709 = vmatmul.mubr.msk.f32.gmra.mxu1 %vm281_vm0, %v5528_v45  ;;  %4761 = vmatprep.mubr.msk.f32.mxu0 %vm281_vm0, %v5541_v48  ;;  %v5780_v48 = vld [vmem:[%s5333_s9 + $0x150] sm:$0xff]  ;;  %6938 = vst [vmem:[#allocation32_spill] sm:$0xff] %v5783_v46 }
  0x43   : > { %4711 = vmatprep.mubr.msk.f32.mxu1 %vm281_vm0, %v5538_v47 }
  0x45   : > { %4762 = vmatmul.mubr.msk.f32.gmra.mxu0 %vm281_vm0, %v5557_v50  ;;  %v5763_v50 = vld [vmem:[%s5333_s9 + $0x13a] sm:$0xff] }
  0x46   : > { %4712 = vmatmul.mubr.msk.f32.gmra.mxu1 %vm281_vm0, %v5554_v49  ;;  %4764 = vmatprep.mubr.msk.f32.mxu0 %vm281_vm0, %v5563_v52  ;;  %v5760_v52 = vld [vmem:[%s5333_s9 + $0x138] sm:$0xff]  ;;  %6936 = vst [vmem:[#allocation30_spill] sm:$0xff] %v5763_v50 }
  0x47   : > { %4714 = vmatprep.mubr.msk.f32.mxu1 %vm281_vm0, %v5560_v51 }
  0x49   : > { %4765 = vmatmul.mubr.msk.f32.gmra.mxu0 %vm281_vm0, %v5577_v54  ;;  %v5743_v54 = vld [vmem:[%s5333_s9 + $0x122] sm:$0xff] }
  0x4a   : > { %4715 = vmatmul.mubr.msk.f32.gmra.mxu1 %vm281_vm0, %v5574_v53  ;;  %4767 = vmatprep.mubr.msk.f32.mxu0 %vm281_vm0, %v5583_v56  ;;  %v5740_v56 = vld [vmem:[%s5333_s9 + $0x120] sm:$0xff]  ;;  %6934 = vst [vmem:[#allocation28_spill] sm:$0xff] %v5743_v54 }
  0x4b   : > { %4717 = vmatprep.mubr.msk.f32.mxu1 %vm281_vm0, %v5580_v55 }
  0x4d   : > { %4768 = vmatmul.mubr.msk.f32.gmra.mxu0 %vm281_vm0, %v5597_v58  ;;  %v5723_v58 = vld [vmem:[%s5333_s9 + $0x10a] sm:$0xff] }
  0x4e   : > { %4718 = vmatmul.mubr.msk.f32.gmra.mxu1 %vm281_vm0, %v5594_v57  ;;  %4770 = vmatprep.mubr.msk.f32.mxu0 %vm281_vm0, %v5603_v60  ;;  %v5720_v60 = vld [vmem:[%s5333_s9 + $0x108] sm:$0xff]  ;;  %6932 = vst [vmem:[#allocation26_spill] sm:$0xff] %v5723_v58 }
  0x4f   : > { %4720 = vmatprep.mubr.msk.f32.mxu1 %vm281_vm0, %v5600_v59 }
  0x51   : > { %4771 = vmatmul.mubr.msk.f32.gmra.mxu0 %vm281_vm0, %v5617_v62  ;;  %v5703_v62 = vld [vmem:[%s5333_s9 + $0xf2] sm:$0xff] }
  0x52   : > { %4721 = vmatmul.mubr.msk.f32.gmra.mxu1 %vm281_vm0, %v5614_v61  ;;  %4773 = vmatprep.mubr.msk.f32.mxu0 %vm281_vm0, %v5623_v0  ;;  %v5700_v0 = vld [vmem:[%s5333_s9 + $0xf0] sm:$0xff]  ;;  %6930 = vst [vmem:[#allocation24_spill] sm:$0xff] %v5703_v62 }
  0x53   : > { %4723 = vmatprep.mubr.msk.f32.mxu1 %vm281_vm0, %v5620_v63 }
  0x55   : > { %4774 = vmatmul.mubr.msk.f32.gmra.mxu0 %vm281_vm0, %v5637_v2  ;;  %v5683_v2 = vld [vmem:[%s5333_s9 + $0xda] sm:$0xff] }
  0x56   : > { %4724 = vmatmul.mubr.msk.f32.gmra.mxu1 %vm281_vm0, %v5634_v1  ;;  %4776 = vmatprep.mubr.msk.f32.mxu0 %vm281_vm0, %v5643_v5  ;;  %v5680_v5 = vld [vmem:[%s5333_s9 + $0xd8] sm:$0xff]  ;;  %6928 = vst [vmem:[#allocation22_spill] sm:$0xff] %v5683_v2 }
  0x57   : > { %4726 = vmatprep.mubr.msk.f32.mxu1 %vm281_vm0, %v5640_v3 }
  0x59   : > { %4777 = vmatmul.mubr.msk.f32.gmra.mxu0 %vm281_vm0, %v5657_v10  ;;  %v5697_v10 = vld [vmem:[%s5333_s9 + $0xe2] sm:$0xff] }
  0x5a   : > { %4727 = vmatmul.mubr.msk.f32.gmra.mxu1 %vm281_vm0, %v5654_v9  ;;  %4779 = vmatprep.mubr.msk.f32.mxu0 %vm281_vm0, %v5663_v38  ;;  %v5694_v38 = vld [vmem:[%s5333_s9 + $0xe0] sm:$0xff]  ;;  %6929 = vst [vmem:[#allocation23_spill] sm:$0xff] %v5697_v10 }
  0x5b   : > { %4729 = vmatprep.mubr.msk.f32.mxu1 %vm281_vm0, %v5660_v37 }
  0x5d   : > { %4780 = vmatmul.mubr.msk.f32.gmra.mxu0 %vm281_vm0, %v5677_v40  ;;  %v5717_v40 = vld [vmem:[%s5333_s9 + $0xfa] sm:$0xff] }
  0x5e   : > { %4730 = vmatmul.mubr.msk.f32.gmra.mxu1 %vm281_vm0, %v5674_v39  ;;  %4782 = vmatprep.mubr.msk.f32.mxu0 %vm281_vm0, %v5683_v2  ;;  %v5714_v2 = vld [vmem:[%s5333_s9 + $0xf8] sm:$0xff]  ;;  %6931 = vst [vmem:[#allocation25_spill] sm:$0xff] %v5717_v40 }
  0x5f   : > { %4732 = vmatprep.mubr.msk.f32.mxu1 %vm281_vm0, %v5680_v5 }
  0x61   : > { %4783 = vmatmul.mubr.msk.f32.gmra.mxu0 %vm281_vm0, %v5697_v10  ;;  %v5737_v10 = vld [vmem:[%s5333_s9 + $0x112] sm:$0xff] }
  0x62   : > { %4733 = vmatmul.mubr.msk.f32.gmra.mxu1 %vm281_vm0, %v5694_v38  ;;  %4785 = vmatprep.mubr.msk.f32.mxu0 %vm281_vm0, %v5703_v62  ;;  %v5734_v62 = vld [vmem:[%s5333_s9 + $0x110] sm:$0xff]  ;;  %6933 = vst [vmem:[#allocation27_spill] sm:$0xff] %v5737_v10 }
  0x63   : > { %4735 = vmatprep.mubr.msk.f32.mxu1 %vm281_vm0, %v5700_v0 }
  0x65   : > { %4786 = vmatmul.mubr.msk.f32.gmra.mxu0 %vm281_vm0, %v5717_v40  ;;  %v5757_v40 = vld [vmem:[%s5333_s9 + $0x12a] sm:$0xff] }
  0x66   : > { %4736 = vmatmul.mubr.msk.f32.gmra.mxu1 %vm281_vm0, %v5714_v2  ;;  %4788 = vmatprep.mubr.msk.f32.mxu0 %vm281_vm0, %v5723_v58  ;;  %v5754_v58 = vld [vmem:[%s5333_s9 + $0x128] sm:$0xff]  ;;  %6935 = vst [vmem:[#allocation29_spill] sm:$0xff] %v5757_v40 }
  0x67   : > { %4738 = vmatprep.mubr.msk.f32.mxu1 %vm281_vm0, %v5720_v60 }
  0x69   : > { %4789 = vmatmul.mubr.msk.f32.gmra.mxu0 %vm281_vm0, %v5737_v10  ;;  %v5777_v10 = vld [vmem:[%s5333_s9 + $0x142] sm:$0xff] }
  0x6a   : > { %4739 = vmatmul.mubr.msk.f32.gmra.mxu1 %vm281_vm0, %v5734_v62  ;;  %4791 = vmatprep.mubr.msk.f32.mxu0 %vm281_vm0, %v5743_v54  ;;  %v5774_v54 = vld [vmem:[%s5333_s9 + $0x140] sm:$0xff]  ;;  %6937 = vst [vmem:[#allocation31_spill] sm:$0xff] %v5777_v10 }
  0x6b   : > { %4741 = vmatprep.mubr.msk.f32.mxu1 %vm281_vm0, %v5740_v56 }
  0x6d   : > { %4792 = vmatmul.mubr.msk.f32.gmra.mxu0 %vm281_vm0, %v5757_v40  ;;  %v5797_v40 = vld [vmem:[%s5333_s9 + $0x15a] sm:$0xff] }
  0x6e   : > { %4742 = vmatmul.mubr.msk.f32.gmra.mxu1 %vm281_vm0, %v5754_v58  ;;  %4794 = vmatprep.mubr.msk.f32.mxu0 %vm281_vm0, %v5763_v50  ;;  %v5794_v50 = vld [vmem:[%s5333_s9 + $0x158] sm:$0xff]  ;;  %6939 = vst [vmem:[#allocation33_spill] sm:$0xff] %v5797_v40 }
  0x6f   : > { %4744 = vmatprep.mubr.msk.f32.mxu1 %vm281_vm0, %v5760_v52 }
  0x71   : > { %4795 = vmatmul.mubr.msk.f32.gmra.mxu0 %vm281_vm0, %v5777_v10  ;;  %v5817_v10 = vld [vmem:[%s5333_s9 + $0x172] sm:$0xff] }
  0x72   : > { %4745 = vmatmul.mubr.msk.f32.gmra.mxu1 %vm281_vm0, %v5774_v54  ;;  %4797 = vmatprep.mubr.msk.f32.mxu0 %vm281_vm0, %v5783_v46  ;;  %v5814_v46 = vld [vmem:[%s5333_s9 + $0x170] sm:$0xff]  ;;  %6941 = vst [vmem:[#allocation35_spill] sm:$0xff] %v5817_v10 }
  0x73   : > { %4747 = vmatprep.mubr.msk.f32.mxu1 %vm281_vm0, %v5780_v48 }
  0x75   : > { %4798 = vmatmul.mubr.msk.f32.gmra.mxu0 %vm281_vm0, %v5797_v40 }
  0x76   : > { %4748 = vmatmul.mubr.msk.f32.gmra.mxu1 %vm281_vm0, %v5794_v50  ;;  %4800 = vmatprep.mubr.msk.f32.mxu0 %vm281_vm0, %v5803_v36  ;;  %v5834_v36 = vld [vmem:[%s6846_s1 + $0x38] sm:$0xff] }
  0x77   : > { %4750 = vmatprep.mubr.msk.f32.mxu1 %vm281_vm0, %v5800_v42 }
  0x79   : > { %4801 = vmatmul.mubr.msk.f32.gmra.mxu0 %vm281_vm0, %v5817_v10  ;;  %v5839_v10 = vld [vmem:[%s6846_s1 + $0x40] sm:$0xff] }
  0x7a   : > { %4751 = vmatmul.mubr.msk.f32.gmra.mxu1 %vm281_vm0, %v5814_v46  ;;  %4855 = vmatprep.mubr.msk.f32.mxu0 %vm281_vm0, %v5347_v7  ;;  %v6943_v7 = vld [vmem:[#allocation5_spill] sm:$0xff] }
  0x7b   : > { %4805 = vmatprep.mubr.msk.f32.mxu1 %vm281_vm0, %v5508_v41 }
  0x7d   : > { %4856 = vmatmul.mubr.msk.f32.vlgmr.msra.gmra.mxu0 %vm281_vm0, %v5366_v11  ;;  %v5971_v11 = vld [vmem:[%s5333_s9 + $0x189] sm:$0xff] }
  0x7e   : > { %4806 = vmatmul.mubr.msk.f32.vlgmr.msra.gmra.mxu1 %vm281_vm0, %v5528_v45  ;;  %4954 = vmatpush3.msra.mxu0 %v5523_v44  ;;  %6944 = vst [vmem:[#allocation5_spill] sm:$0xff] %v5971_v11  ;;  %v6962_v44 = vld [vmem:[#allocation23_spill] sm:$0xff]  ;;  %v6963_v45 = vld [vmem:[#allocation24_spill] sm:$0xff] }
  0x7f   : > { %4904 = vmatpush3.msra.mxu1 %v5518_v43  ;;  %4808 = vmatprep.mubr.msk.f32.mxu1 %vm281_vm0, %v5538_v47 }
  0x80   : > { %4858 = vmatprep.mubr.msk.f32.mxu0 %vm281_vm0, %v5376_v13  ;;  %5003 = vmatprep.subr.mxu1 %v5834_v36 }
  0x81   : > { %5053 = vmatprep.subr.mxu0 %v5839_v10  ;;  %4859 = vmatmul.mubr.msk.f32.gmra.mxu0 %vm281_vm0, %v5392_v15 }
  0x82   : > { %4809 = vmatmul.mubr.msk.f32.gmra.mxu1 %vm281_vm0, %v5554_v49  ;;  %4861 = vmatprep.mubr.msk.f32.mxu0 %vm281_vm0, %v5398_v17 }
  0x83   : > { %4811 = vmatprep.mubr.msk.f32.mxu1 %vm281_vm0, %v5560_v51 }
  0x85   : > { %4862 = vmatmul.mubr.msk.f32.gmra.mxu0 %vm281_vm0, %v5412_v19 }
  0x86   : > { %4812 = vmatmul.mubr.msk.f32.gmra.mxu1 %vm281_vm0, %v5574_v53  ;;  %4864 = vmatprep.mubr.msk.f32.mxu0 %vm281_vm0, %v5418_v21 }
  0x87   : > { %4814 = vmatprep.mubr.msk.f32.mxu1 %vm281_vm0, %v5580_v55 }
  0x89   : > { %4865 = vmatmul.mubr.msk.f32.gmra.mxu0 %vm281_vm0, %v5432_v23 }
  0x8a   : > { %4815 = vmatmul.mubr.msk.f32.gmra.mxu1 %vm281_vm0, %v5594_v57  ;;  %4867 = vmatprep.mubr.msk.f32.mxu0 %vm281_vm0, %v5438_v25 }
  0x8b   : > { %4817 = vmatprep.mubr.msk.f32.mxu1 %vm281_vm0, %v5600_v59 }
  0x8d   : > { %4868 = vmatmul.mubr.msk.f32.gmra.mxu0 %vm281_vm0, %v5452_v27 }
  0x8e   : > { %4818 = vmatmul.mubr.msk.f32.gmra.mxu1 %vm281_vm0, %v5614_v61  ;;  %4870 = vmatprep.mubr.msk.f32.mxu0 %vm281_vm0, %v5458_v29  ;;  %v6954_v29 = vld [vmem:[#allocation15_spill] sm:$0xff] }
  0x8f   : > { %4820 = vmatprep.mubr.msk.f32.mxu1 %vm281_vm0, %v5620_v63 }
  0x91   : > { %4871 = vmatmul.mubr.msk.f32.gmra.mxu0 %vm281_vm0, %v5472_v31  ;;  %v6956_v31 = vld [vmem:[#allocation17_spill] sm:$0xff] }
  0x92   : > { %4821 = vmatmul.mubr.msk.f32.gmra.mxu1 %vm281_vm0, %v5634_v1  ;;  %4873 = vmatprep.mubr.msk.f32.mxu0 %vm281_vm0, %v5478_v33  ;;  %v6958_v33 = vld [vmem:[#allocation19_spill] sm:$0xff] }
  0x93   : > { %4823 = vmatprep.mubr.msk.f32.mxu1 %vm281_vm0, %v5640_v3 }
  0x95   : > { %4874 = vmatmul.mubr.msk.f32.gmra.mxu0 %vm281_vm0, %v5492_v35  ;;  %v6960_v35 = vld [vmem:[#allocation21_spill] sm:$0xff] }
  0x96   : > { %4824 = vmatmul.mubr.msk.f32.gmra.mxu1 %vm281_vm0, %v5654_v9  ;;  %4876 = vmatprep.mubr.msk.f32.mxu0 %vm281_vm0, %v5337_v4  ;;  %v5954_v4 = vld [vmem:[%s5333_s9 + $0x180] sm:$0xff] }
  0x97   : > { %4826 = vmatprep.mubr.msk.f32.mxu1 %vm281_vm0, %v5660_v37 }
  0x99   : > { %4877 = vmatmul.mubr.msk.f32.gmra.mxu0 %vm281_vm0, %v5344_v6  ;;  %v5957_v6 = vld [vmem:[%s5333_s9 + $0x181] sm:$0xff] }
  0x9a   : > { %4827 = vmatmul.mubr.msk.f32.gmra.mxu1 %vm281_vm0, %v5674_v39  ;;  %4879 = vmatprep.mubr.msk.f32.mxu0 %vm281_vm0, %v5350_v8  ;;  %6942 = vst [vmem:[#allocation36_spill] sm:$0xff] %v5957_v6  ;;  %v5968_v8 = vld [vmem:[%s5333_s9 + $0x188] sm:$0xff] }
  0x9b   : > { %4829 = vmatprep.mubr.msk.f32.mxu1 %vm281_vm0, %v5680_v5 }
  0x9d   : > { %4880 = vmatmul.mubr.msk.f32.gmra.mxu0 %vm281_vm0, %v5369_v12  ;;  %v6945_v12 = vld [vmem:[#allocation6_spill] sm:$0xff] }
  0x9e   : > { %4830 = vmatmul.mubr.msk.f32.gmra.mxu1 %vm281_vm0, %v5694_v38  ;;  %4882 = vmatprep.mubr.msk.f32.mxu0 %vm281_vm0, %v5379_v14  ;;  %v6946_v14 = vld [vmem:[#allocation7_spill] sm:$0xff] }
  0x9f   : > { %4832 = vmatprep.mubr.msk.f32.mxu1 %vm281_vm0, %v5700_v0 }
  0xa1   : > { %4883 = vmatmul.mubr.msk.f32.gmra.mxu0 %vm281_vm0, %v5395_v16  ;;  %v6947_v16 = vld [vmem:[#allocation8_spill] sm:$0xff] }
  0xa2   : > { %4833 = vmatmul.mubr.msk.f32.gmra.mxu1 %vm281_vm0, %v5714_v2  ;;  %4885 = vmatprep.mubr.msk.f32.mxu0 %vm281_vm0, %v5401_v18  ;;  %v6948_v18 = vld [vmem:[#allocation9_spill] sm:$0xff] }
  0xa3   : > { %4835 = vmatprep.mubr.msk.f32.mxu1 %vm281_vm0, %v5720_v60 }
  0xa5   : > { %4886 = vmatmul.mubr.msk.f32.gmra.mxu0 %vm281_vm0, %v5415_v20  ;;  %v6949_v20 = vld [vmem:[#allocation10_spill] sm:$0xff] }
  0xa6   : > { %4836 = vmatmul.mubr.msk.f32.gmra.mxu1 %vm281_vm0, %v5734_v62  ;;  %4888 = vmatprep.mubr.msk.f32.mxu0 %vm281_vm0, %v5421_v22  ;;  %v6950_v22 = vld [vmem:[#allocation11_spill] sm:$0xff] }
  0xa7   : > { %4838 = vmatprep.mubr.msk.f32.mxu1 %vm281_vm0, %v5740_v56 }
  0xa9   : > { %4889 = vmatmul.mubr.msk.f32.gmra.mxu0 %vm281_vm0, %v5435_v24  ;;  %v6951_v24 = vld [vmem:[#allocation12_spill] sm:$0xff] }
  0xaa   : > { %4839 = vmatmul.mubr.msk.f32.gmra.mxu1 %vm281_vm0, %v5754_v58  ;;  %4891 = vmatprep.mubr.msk.f32.mxu0 %vm281_vm0, %v5441_v26  ;;  %v6952_v26 = vld [vmem:[#allocation13_spill] sm:$0xff] }
  0xab   : > { %4841 = vmatprep.mubr.msk.f32.mxu1 %vm281_vm0, %v5760_v52 }
  0xad   : > { %4892 = vmatmul.mubr.msk.f32.gmra.mxu0 %vm281_vm0, %v5455_v28  ;;  %v6953_v28 = vld [vmem:[#allocation14_spill] sm:$0xff] }
  0xae   : > { %4842 = vmatmul.mubr.msk.f32.gmra.mxu1 %vm281_vm0, %v5774_v54  ;;  %4894 = vmatprep.mubr.msk.f32.mxu0 %vm281_vm0, %v5461_v30  ;;  %v6955_v30 = vld [vmem:[#allocation16_spill] sm:$0xff] }
  0xaf   : > { %4844 = vmatprep.mubr.msk.f32.mxu1 %vm281_vm0, %v5780_v48 }
  0xb1   : > { %4895 = vmatmul.mubr.msk.f32.gmra.mxu0 %vm281_vm0, %v5475_v32  ;;  %v6957_v32 = vld [vmem:[#allocation18_spill] sm:$0xff] }
  0xb2   : > { %4845 = vmatmul.mubr.msk.f32.gmra.mxu1 %vm281_vm0, %v5794_v50  ;;  %4897 = vmatprep.mubr.msk.f32.mxu0 %vm281_vm0, %v5481_v34  ;;  %v6959_v34 = vld [vmem:[#allocation20_spill] sm:$0xff] }
  0xb3   : > { %4847 = vmatprep.mubr.msk.f32.mxu1 %vm281_vm0, %v5800_v42 }
  0xb5   : > { %4898 = vmatmul.mubr.msk.f32.gmra.mxu0 %vm281_vm0, %v6943_v7 }
  0xb6   : > { %4848 = vmatmul.mubr.msk.f32.gmra.mxu1 %vm281_vm0, %v5814_v46  ;;  %4900 = vmatprep.mubr.msk.f32.mxu0 %vm281_vm0, %v5957_v6  ;;  %v4184_v6 = vld [vmem:[%s5333_s9 + $0x198] sm:$0xff] }
  0xb7   : > { %4850 = vmatprep.mubr.msk.f32.mxu1 %vm281_vm0, %v5954_v4 }
  0xb9   : > { %4901 = vmatmul.mubr.msk.f32.gmra.mxu0 %vm281_vm0, %v5971_v11  ;;  %v6144_v11 = vld [vmem:[%s5333_s9 + $0x182] sm:$0xff] }
  0xba   : > { %4851 = vmatmul.mubr.msk.f32.gmra.mxu1 %vm281_vm0, %v5968_v8  ;;  %4955 = vmatprep.mubr.msk.f32.mxu0 %vm281_vm0, %v5538_v47  ;;  %6977 = vst [vmem:[#allocation10_spill] sm:$0xff] %v6144_v11 }
  0xbb   : > { %4905 = vmatprep.mubr.msk.f32.mxu1 %vm281_vm0, %v6945_v12 }
  0xbd   : > { %4956 = vmatmul.mubr.msk.f32.vlgmr.msra.gmra.mxu0 %vm281_vm0, %v5554_v49 }
  0xbe   : > { %4906 = vmatmul.mubr.msk.f32.vlgmr.msra.gmra.mxu1 %vm281_vm0, %v6946_v14  ;;  %5054 = vmatpush3.msra.mxu0 %v5839_v10 }
  0xbf   : > { %5004 = vmatpush3.msra.mxu1 %v5834_v36  ;;  %4908 = vmatprep.mubr.msk.f32.mxu1 %vm281_vm0, %v6947_v16  ;;  %v6961_v36 = vld [vmem:[#allocation22_spill] sm:$0xff] }
  0xc0   : > { %4958 = vmatprep.mubr.msk.f32.mxu0 %vm281_vm0, %v5560_v51 }
  0xc1   : > { %4959 = vmatmul.mubr.msk.f32.gmra.mxu0 %vm281_vm0, %v5574_v53 }
  0xc2   : > { %4909 = vmatmul.mubr.msk.f32.gmra.mxu1 %vm281_vm0, %v6948_v18  ;;  %4961 = vmatprep.mubr.msk.f32.mxu0 %vm281_vm0, %v5580_v55  ;;  %v6964_v55 = vld [vmem:[#allocation25_spill] sm:$0xff] }
  0xc3   : > { %4911 = vmatprep.mubr.msk.f32.mxu1 %vm281_vm0, %v6949_v20 }
  0xc5   : > { %4962 = vmatmul.mubr.msk.f32.gmra.mxu0 %vm281_vm0, %v5594_v57  ;;  %v6965_v57 = vld [vmem:[#allocation26_spill] sm:$0xff] }
  0xc6   : > { %4912 = vmatmul.mubr.msk.f32.gmra.mxu1 %vm281_vm0, %v6950_v22  ;;  %4964 = vmatprep.mubr.msk.f32.mxu0 %vm281_vm0, %v5600_v59 }
  0xc7   : > { %4914 = vmatprep.mubr.msk.f32.mxu1 %vm281_vm0, %v6951_v24 }
  0xc9   : > { %4965 = vmatmul.mubr.msk.f32.gmra.mxu0 %vm281_vm0, %v5614_v61 }
  0xca   : > { %4915 = vmatmul.mubr.msk.f32.gmra.mxu1 %vm281_vm0, %v6952_v26  ;;  %4967 = vmatprep.mubr.msk.f32.mxu0 %vm281_vm0, %v5620_v63 }
  0xcb   : > { %4917 = vmatprep.mubr.msk.f32.mxu1 %vm281_vm0, %v6953_v28 }
  0xcd   : > { %4968 = vmatmul.mubr.msk.f32.gmra.mxu0 %vm281_vm0, %v5634_v1 }
  0xce   : > { %4918 = vmatmul.mubr.msk.f32.gmra.mxu1 %vm281_vm0, %v6954_v29  ;;  %4970 = vmatprep.mubr.msk.f32.mxu0 %vm281_vm0, %v5640_v3 }
  0xcf   : > { %4920 = vmatprep.mubr.msk.f32.mxu1 %vm281_vm0, %v6955_v30 }
  0xd1   : > { %4971 = vmatmul.mubr.msk.f32.gmra.mxu0 %vm281_vm0, %v5654_v9 }
  0xd2   : > { %4921 = vmatmul.mubr.msk.f32.gmra.mxu1 %vm281_vm0, %v6956_v31  ;;  %4973 = vmatprep.mubr.msk.f32.mxu0 %vm281_vm0, %v5660_v37 }
  0xd3   : > { %4923 = vmatprep.mubr.msk.f32.mxu1 %vm281_vm0, %v6957_v32 }
  0xd5   : > { %4974 = vmatmul.mubr.msk.f32.gmra.mxu0 %vm281_vm0, %v5674_v39 }
  0xd6   : > { %4924 = vmatmul.mubr.msk.f32.gmra.mxu1 %vm281_vm0, %v6958_v33  ;;  %4976 = vmatprep.mubr.msk.f32.mxu0 %vm281_vm0, %v5680_v5  ;;  %v6968_v5 = vld [vmem:[#allocation29_spill] sm:$0xff] }
  0xd7   : > { %4926 = vmatprep.mubr.msk.f32.mxu1 %vm281_vm0, %v6959_v34 }
  0xd9   : > { %4977 = vmatmul.mubr.msk.f32.gmra.mxu0 %vm281_vm0, %v5694_v38  ;;  %v6971_v38 = vld [vmem:[#allocation31_spill] sm:$0xff] }
  0xda   : > { %4927 = vmatmul.mubr.msk.f32.gmra.mxu1 %vm281_vm0, %v6960_v35  ;;  %4979 = vmatprep.mubr.msk.f32.mxu0 %vm281_vm0, %v5700_v0  ;;  %v6966_v0 = vld [vmem:[#allocation27_spill] sm:$0xff] }
  0xdb   : > { %4929 = vmatprep.mubr.msk.f32.mxu1 %vm281_vm0, %v6961_v36 }
  0xdd   : > { %v6047_v41 = vpop.f32.mrf.mxu0  ;;  %4980 = vmatmul.mubr.msk.f32.gmra.mxu0 %vm281_vm0, %v5714_v2 }
  0xde   : > { %v6049_v43 = vpop.f32.mrf.mxu1  ;;  %4930 = vmatmul.mubr.msk.f32.gmra.mxu1 %vm281_vm0, %v6962_v44  ;;  %4982 = vmatprep.mubr.msk.f32.mxu0 %vm281_vm0, %v5720_v60 }
  0xdf   : > { %4932 = vmatprep.mubr.msk.f32.mxu1 %vm281_vm0, %v6963_v45  ;;  %v6059_v47 = vpop.f32.mrf.mxu0 }
  0xe0   : > { %v6061_v49 = vpop.f32.mrf.mxu1 }
  0xe1   : > { %v6063_v51 = vpop.f32.mrf.mxu0  ;;  %4983 = vmatmul.mubr.msk.f32.gmra.mxu0 %vm281_vm0, %v5734_v62  ;;  %v6967_v62 = vld [vmem:[#allocation28_spill] sm:$0xff] }
  0xe2   : > { %v6065_v53 = vpop.f32.mrf.mxu1  ;;  %4933 = vmatmul.mubr.msk.f32.gmra.mxu1 %vm281_vm0, %v6964_v55  ;;  %4985 = vmatprep.mubr.msk.f32.mxu0 %vm281_vm0, %v5740_v56 }
  0xe3   : > { %4935 = vmatprep.mubr.msk.f32.mxu1 %vm281_vm0, %v6965_v57  ;;  %v6075_v59 = vpop.f32.mrf.mxu0 }
  0xe4   : > { %v6077_v60 = vpop.f32.mrf.mxu1 }
  0xe5   : > { %v6079_v61 = vpop.f32.mrf.mxu0  ;;  %4986 = vmatmul.mubr.msk.f32.gmra.mxu0 %vm281_vm0, %v5754_v58  ;;  %v6969_v58 = vld [vmem:[#allocation30_spill] sm:$0xff] }
  0xe6   : > { %v6081_v63 = vpop.f32.mrf.mxu1  ;;  %4936 = vmatmul.mubr.msk.f32.gmra.mxu1 %vm281_vm0, %v6966_v0  ;;  %4988 = vmatprep.mubr.msk.f32.mxu0 %vm281_vm0, %v5760_v52 }
  0xe7   : > { %4938 = vmatprep.mubr.msk.f32.mxu1 %vm281_vm0, %v6967_v62  ;;  %v6091_v56 = vpop.f32.mrf.mxu0 }
  0xe8   : > { %v6093_v1 = vpop.f32.mrf.mxu1 }
  0xe9   : > { %v6095_v2 = vpop.f32.mrf.mxu0  ;;  %4989 = vmatmul.mubr.msk.f32.gmra.mxu0 %vm281_vm0, %v5774_v54  ;;  %v6972_v54 = vld [vmem:[#allocation32_spill] sm:$0xff] }
  0xea   : > { %v6097_v3 = vpop.f32.mrf.mxu1  ;;  %4939 = vmatmul.mubr.msk.f32.gmra.mxu1 %vm281_vm0, %v6968_v5  ;;  %4991 = vmatprep.mubr.msk.f32.mxu0 %vm281_vm0, %v5780_v48 }
  0xeb   : > { %4941 = vmatprep.mubr.msk.f32.mxu1 %vm281_vm0, %v6969_v58  ;;  %v6107_v52 = vpop.f32.mrf.mxu0 }
  0xec   : > { %v6109_v9 = vpop.f32.mrf.mxu1 }
  0xed   : > { %v6111_v10 = vpop.f32.mrf.mxu0  ;;  %4992 = vmatmul.mubr.msk.f32.gmra.mxu0 %vm281_vm0, %v5794_v50  ;;  %v6975_v50 = vld [vmem:[#allocation34_spill] sm:$0xff] }
  0xee   : > { %v6113_v37 = vpop.f32.mrf.mxu1  ;;  %4942 = vmatmul.mubr.msk.f32.gmra.mxu1 %vm281_vm0, %v6971_v38  ;;  %4994 = vmatprep.mubr.msk.f32.mxu0 %vm281_vm0, %v5800_v42 }
  0xef   : > { %6970 = vst [vmem:[#allocation6_spill] sm:$0xff] %v6113_v37  ;;  %4944 = vmatprep.mubr.msk.f32.mxu1 %vm281_vm0, %v6972_v54  ;;  %v6123_v48 = vpop.f32.mrf.mxu0  ;;  %v6979_v37 = vld [vmem:[#allocation35_spill] sm:$0xff] }
  0xf0   : > { %v6125_v39 = vpop.f32.mrf.mxu1 }
  0xf1   : > { %6973 = vst [vmem:[#allocation7_spill] sm:$0xff] %v6125_v39  ;;  %v6127_v7 = vpop.f32.mrf.mxu0  ;;  %4995 = vmatmul.mubr.msk.f32.gmra.mxu0 %vm281_vm0, %v5814_v46  ;;  %v6159_v46 = vld [vmem:[%s5333_s9 + $0x18a] sm:$0xff] }
  0xf2   : > { %v6129_v12 = vpop.f32.mrf.mxu1  ;;  %4945 = vmatmul.mubr.msk.f32.gmra.mxu1 %vm281_vm0, %v5797_v40  ;;  %4997 = vmatprep.mubr.msk.f32.mxu0 %vm281_vm0, %v5954_v4  ;;  %6980 = vst [vmem:[#allocation12_spill] sm:$0xff] %v6159_v46  ;;  %v4185_v4 = vld [vmem:[%s5333_s9 + $0x1a0] sm:$0xff] }
  0xf3   : > { %6974 = vst [vmem:[#allocation8_spill] sm:$0xff] %v6129_v12  ;;  %4947 = vmatprep.mubr.msk.f32.mxu1 %vm281_vm0, %v6975_v50  ;;  %v6139_v42 = vpop.f32.mrf.mxu0 }
  0xf4   : > { %v6141_v14 = vpop.f32.mrf.mxu1 }
  0xf5   : > { %6976 = vst [vmem:[#allocation9_spill] sm:$0xff] %v6141_v14  ;;  %v6147_v12 = vpop.f32.mrf.mxu0  ;;  %4998 = vmatmul.mubr.msk.f32.gmra.mxu0 %vm281_vm0, %v5968_v8 }
  0xf6   : > { %v6149_v39 = vpop.f32.mrf.mxu1  ;;  %4948 = vmatmul.mubr.msk.f32.gmra.mxu1 %vm281_vm0, %v6979_v37  ;;  %5000 = vmatprep.mubr.msk.f32.mxu0 %vm281_vm0, %v4184_v6 }
  0xf7   : > { %6978 = vst [vmem:[#allocation11_spill] sm:$0xff] %v6149_v39  ;;  %4950 = vmatprep.mubr.msk.f32.mxu1 %vm281_vm0, %v6144_v11  ;;  %v6162_v50 = vpop.f32.mrf.mxu0 }
  0xf8   : > { %v6164_v14 = vpop.f32.mrf.mxu1 }
  0xf9   : > { %6981 = vst [vmem:[#allocation13_spill] sm:$0xff] %v6164_v14  ;;  %v6166_v40 = vpop.f32.mrf.mxu0  ;;  %5001 = vmatmul.mubr.msk.f32.gmra.mxu0 %vm281_vm0, %v4185_v4 }
  0xfa   : > { %v6168_v39 = vpop.f32.mrf.mxu1  ;;  %4951 = vmatmul.mubr.msk.f32.gmra.mxu1 %vm281_vm0, %v6159_v46  ;;  %5055 = vmatprep.mubr.msk.f32.mxu0 %vm281_vm0, %v6947_v16 }
  0xfb   : > { %6982 = vst [vmem:[#allocation14_spill] sm:$0xff] %v6168_v39  ;;  %5005 = vmatprep.mubr.msk.f32.mxu1 %vm281_vm0, %v5376_v13  ;;  %v6177_v6 = vpop.f32.mrf.mxu0 }
  0xfc   : > { %v6179_v8 = vpop.f32.mrf.mxu1 }
  0xfd   : > { %6983 = vst [vmem:[#allocation15_spill] sm:$0xff] %v6179_v8  ;;  %v4757_v14 = vpop.f32.mrf.mxu0  ;;  %5056 = vmatmul.mubr.msk.f32.vlgmr.msra.gmra.mxu0 %vm281_vm0, %v6948_v18 }
  0xfe   : > { %v4707_v37 = vpop.f32.mrf.mxu1  ;;  %5006 = vmatmul.mubr.msk.f32.vlgmr.msra.gmra.mxu1 %vm281_vm0, %v5392_v15  ;;  %5058 = vmatprep.mubr.msk.f32.mxu0 %vm281_vm0, %v6949_v20 }
  0xff   : > { %v771_v4 = vadd.f32 %v4707_v37, %v6047_v41  ;;  %5008 = vmatprep.mubr.msk.f32.mxu1 %vm281_vm0, %v5398_v17  ;;  %v1120_v16 = vpop.f32.mrf.mxu0  ;;  %v4229_v37 = vld [vmem:[%s5333_s9 + $0xa9] sm:$0xff] }
 0x100   : > { %v765_v13 = vpop.f32.mrf.mxu1 }
 0x101   : > { %v6190_v39 = vadd.f32 %v4757_v14, %v771_v4  ;;  %v766_v8 = vadd.f32 %v765_v13, %v6059_v47  ;;  %v4760_v11 = vpop.f32.mrf.mxu0  ;;  %5059 = vmatmul.mubr.msk.f32.gmra.mxu0 %vm281_vm0, %v6950_v22 }
 0x102   : > { %v4710_v46 = vpop.f32.mrf.mxu1  ;;  %5009 = vmatmul.mubr.msk.f32.gmra.mxu1 %vm281_vm0, %v5412_v19  ;;  %5061 = vmatprep.mubr.msk.f32.mxu0 %vm281_vm0, %v6951_v24 }
 0x103   : > { %v6197_v15 = vadd.f32 %v1120_v16, %v766_v8  ;;  %v781_v17 = vadd.f32 %v4710_v46, %v6063_v51  ;;  %5011 = vmatprep.mubr.msk.f32.mxu1 %vm281_vm0, %v5418_v21  ;;  %v1130_v20 = vpop.f32.mrf.mxu0  ;;  %v4227_v51 = vld [vmem:[%s5333_s9 + $0x91] sm:$0xff] }
 0x104   : > { %v775_v18 = vpop.f32.mrf.mxu1  ;;  %v4230_v16 = vld [vmem:[%s5333_s9 + $0xb1] sm:$0xff] }
 0x105   : > { %v6204_v41 = vadd.f32 %v4760_v11, %v781_v17  ;;  %v776_v19 = vadd.f32 %v775_v18, %v6075_v59  ;;  %v4763_v14 = vpop.f32.mrf.mxu0  ;;  %5062 = vmatmul.mubr.msk.f32.gmra.mxu0 %vm281_vm0, %v6952_v26  ;;  %v4231_v18 = vld [vmem:[%s5333_s9 + $0xc1] sm:$0xff] }
 0x106   : > { %v4713_v47 = vpop.f32.mrf.mxu1  ;;  %5012 = vmatmul.mubr.msk.f32.gmra.mxu1 %vm281_vm0, %v5432_v23  ;;  %5064 = vmatprep.mubr.msk.f32.mxu0 %vm281_vm0, %v6953_v28 }
 0x107   : > { %v6211_v22 = vadd.f32 %v1130_v20, %v776_v19  ;;  %v791_v21 = vadd.f32 %v4713_v47, %v6079_v61  ;;  %5014 = vmatprep.mubr.msk.f32.mxu1 %vm281_vm0, %v5438_v25  ;;  %v1140_v24 = vpop.f32.mrf.mxu0  ;;  %v4228_v61 = vld [vmem:[%s5333_s9 + $0x99] sm:$0xff] }
 0x108   : > { %v785_v11 = vpop.f32.mrf.mxu1 }
 0x109   : > { %v6219_v59 = vadd.f32 %v4763_v14, %v791_v21  ;;  %v786_v23 = vadd.f32 %v785_v11, %v6091_v56  ;;  %v4766_v46 = vpop.f32.mrf.mxu0  ;;  %5065 = vmatmul.mubr.msk.f32.gmra.mxu0 %vm281_vm0, %v6954_v29  ;;  %v4232_v14 = vld [vmem:[%s5333_s9 + $0xc9] sm:$0xff]  ;;  %v4233_v11 = vld [vmem:[%s5333_s9 + $0xd9] sm:$0xff] }
 0x10a   : > { %v4716_v26 = vpop.f32.mrf.mxu1  ;;  %5015 = vmatmul.mubr.msk.f32.gmra.mxu1 %vm281_vm0, %v5452_v27  ;;  %5067 = vmatprep.mubr.msk.f32.mxu0 %vm281_vm0, %v6955_v30 }
 0x10b   : > { %v6226_v25 = vadd.f32 %v1140_v24, %v786_v23  ;;  %v801_v28 = vadd.f32 %v4716_v26, %v6095_v2  ;;  %5017 = vmatprep.mubr.msk.f32.mxu1 %vm281_vm0, %v4227_v51  ;;  %v1150_v8 = vpop.f32.mrf.mxu0  ;;  %v4234_v26 = vld [vmem:[%s5333_s9 + $0xe1] sm:$0xff] }
 0x10c   : > { %v795_v56 = vpop.f32.mrf.mxu1 }
 0x10d   : > { %v6234_v4 = vadd.f32 %v4766_v46, %v801_v28  ;;  %v796_v27 = vadd.f32 %v795_v56, %v6107_v52  ;;  %v4769_v13 = vpop.f32.mrf.mxu0  ;;  %5068 = vmatmul.mubr.msk.f32.gmra.mxu0 %vm281_vm0, %v6956_v31  ;;  %v4235_v28 = vld [vmem:[%s5333_s9 + $0xf1] sm:$0xff] }
 0x10e   : > { %v4719_v29 = vpop.f32.mrf.mxu1  ;;  %5018 = vmatmul.mubr.msk.f32.gmra.mxu1 %vm281_vm0, %v4228_v61  ;;  %5070 = vmatprep.mubr.msk.f32.mxu0 %vm281_vm0, %v6957_v32 }
 0x10f   : > { %v6240_v2 = vadd.f32 %v1150_v8, %v796_v27  ;;  %v811_v30 = vadd.f32 %v4719_v29, %v6111_v10  ;;  %5020 = vmatprep.mubr.msk.f32.mxu1 %vm281_vm0, %v4229_v37  ;;  %v1160_v52 = vpop.f32.mrf.mxu0  ;;  %v4236_v37 = vld [vmem:[%s5333_s9 + $0xf9] sm:$0xff]  ;;  %v4237_v29 = vld [vmem:[%s5333_s9 + $0x109] sm:$0xff] }
 0x110   : > { %v805_v17 = vpop.f32.mrf.mxu1 }
 0x111   : > { %v6248_v20 = vadd.f32 %v4769_v13, %v811_v30  ;;  %v806_v19 = vadd.f32 %v805_v17, %v6123_v48  ;;  %v4772_v47 = vpop.f32.mrf.mxu0  ;;  %5071 = vmatmul.mubr.msk.f32.gmra.mxu0 %vm281_vm0, %v6958_v33  ;;  %v4238_v17 = vld [vmem:[%s5333_s9 + $0x111] sm:$0xff] }
 0x112   : > { %v4722_v31 = vpop.f32.mrf.mxu1  ;;  %5021 = vmatmul.mubr.msk.f32.gmra.mxu1 %vm281_vm0, %v4230_v16  ;;  %5073 = vmatprep.mubr.msk.f32.mxu0 %vm281_vm0, %v6959_v34 }
 0x113   : > { %v6254_v10 = vadd.f32 %v1160_v52, %v806_v19  ;;  %v821_v32 = vadd.f32 %v4722_v31, %v6127_v7  ;;  %5023 = vmatprep.mubr.msk.f32.mxu1 %vm281_vm0, %v4231_v18  ;;  %v1170_v48 = vpop.f32.mrf.mxu0  ;;  %v4239_v18 = vld [vmem:[%s5333_s9 + $0x121] sm:$0xff] }
 0x114   : > { %v815_v21 = vpop.f32.mrf.mxu1 }
 0x115   : > { %v6262_v24 = vadd.f32 %v4772_v47, %v821_v32  ;;  %v816_v51 = vadd.f32 %v815_v21, %v6139_v42  ;;  %v4775_v23 = vpop.f32.mrf.mxu0  ;;  %5074 = vmatmul.mubr.msk.f32.gmra.mxu0 %vm281_vm0, %v6960_v35  ;;  %v4240_v32 = vld [vmem:[%s5333_s9 + $0x129] sm:$0xff]  ;;  %v4241_v21 = vld [vmem:[%s5333_s9 + $0x139] sm:$0xff] }
 0x116   : > { %v4725_v33 = vpop.f32.mrf.mxu1  ;;  %5024 = vmatmul.mubr.msk.f32.gmra.mxu1 %vm281_vm0, %v4232_v14  ;;  %5076 = vmatprep.mubr.msk.f32.mxu0 %vm281_vm0, %v6961_v36 }
 0x117   : > { %v6268_v7 = vadd.f32 %v1170_v48, %v816_v51  ;;  %v831_v34 = vadd.f32 %v4725_v33, %v6147_v12  ;;  %5026 = vmatprep.mubr.msk.f32.mxu1 %vm281_vm0, %v4233_v11  ;;  %v1180_v42 = vpop.f32.mrf.mxu0  ;;  %v4242_v33 = vld [vmem:[%s5333_s9 + $0x141] sm:$0xff] }
 0x118   : > { %v825_v46 = vpop.f32.mrf.mxu1 }
 0x119   : > { %v6276_v61 = vadd.f32 %v4775_v23, %v831_v34  ;;  %v826_v56 = vadd.f32 %v825_v46, %v6162_v50  ;;  %v4778_v8 = vpop.f32.mrf.mxu0  ;;  %5077 = vmatmul.mubr.msk.f32.gmra.mxu0 %vm281_vm0, %v6962_v44  ;;  %v4243_v34 = vld [vmem:[%s5333_s9 + $0x151] sm:$0xff] }
 0x11a   : > { %v4728_v35 = vpop.f32.mrf.mxu1  ;;  %5027 = vmatmul.mubr.msk.f32.gmra.mxu1 %vm281_vm0, %v4234_v26  ;;  %5079 = vmatprep.mubr.msk.f32.mxu0 %vm281_vm0, %v6963_v45 }
 0x11b   : > { %v6282_v12 = vadd.f32 %v1180_v42, %v826_v56  ;;  %v841_v36 = vadd.f32 %v4728_v35, %v6166_v40  ;;  %5029 = vmatprep.mubr.msk.f32.mxu1 %vm281_vm0, %v4235_v28  ;;  %v1190_v50 = vpop.f32.mrf.mxu0  ;;  %v4244_v28 = vld [vmem:[%s5333_s9 + $0x159] sm:$0xff]  ;;  %v4245_v35 = vld [vmem:[%s5333_s9 + $0x169] sm:$0xff] }
 0x11c   : > { %v835_v27 = vpop.f32.mrf.mxu1 }
 0x11d   : > { %v6290_v13 = vadd.f32 %v4778_v8, %v841_v36  ;;  %v836_v30 = vadd.f32 %v835_v27, %v6177_v6  ;;  %v4781_v16 = vpop.f32.mrf.mxu0  ;;  %5080 = vmatmul.mubr.msk.f32.gmra.mxu0 %vm281_vm0, %v6964_v55  ;;  %v4310_v8 = vld [vmem:[%s5333_s9 + $0x16a] sm:$0xff] }
 0x11e   : > { %v4731_v44 = vpop.f32.mrf.mxu1  ;;  %5030 = vmatmul.mubr.msk.f32.gmra.mxu1 %vm281_vm0, %v4236_v37  ;;  %5082 = vmatprep.mubr.msk.f32.mxu0 %vm281_vm0, %v6965_v57 }
 0x11f   : > { %v6296_v40 = vadd.f32 %v1190_v50, %v836_v30  ;;  %v851_v45 = vadd.f32 %v4731_v44, %v6049_v43  ;;  %5032 = vmatprep.mubr.msk.f32.mxu1 %vm281_vm0, %v4237_v29  ;;  %v1200_v6 = vpop.f32.mrf.mxu0  ;;  %v4246_v30 = vld [vmem:[%s5333_s9 + $0x171] sm:$0xff] }
 0x120   : > { %v845_v52 = vpop.f32.mrf.mxu1  ;;  %v4311_v44 = vld [vmem:[%s5333_s9 + $0x172] sm:$0xff] }
 0x121   : > { %v6304_v19 = vadd.f32 %v4781_v16, %v851_v45  ;;  %v846_v31 = vadd.f32 %v845_v52, %v6061_v49  ;;  %v4784_v47 = vpop.f32.mrf.mxu0  ;;  %5083 = vmatmul.mubr.msk.f32.gmra.mxu0 %vm281_vm0, %v6966_v0 }
 0x122   : > { %v4734_v55 = vpop.f32.mrf.mxu1  ;;  %5033 = vmatmul.mubr.msk.f32.gmra.mxu1 %vm281_vm0, %v4238_v17  ;;  %5085 = vmatprep.mubr.msk.f32.mxu0 %vm281_vm0, %v6967_v62  ;;  %v6986_v17 = vld [vmem:[#allocation7_spill] sm:$0xff] }
 0x123   : > { %v6310_v43 = vadd.f32 %v1200_v6, %v846_v31  ;;  %v861_v57 = vadd.f32 %v4734_v55, %v6065_v53  ;;  %5035 = vmatprep.mubr.msk.f32.mxu1 %vm281_vm0, %v4239_v18  ;;  %v1210_v49 = vpop.f32.mrf.mxu0  ;;  %v6987_v55 = vld [vmem:[#allocation8_spill] sm:$0xff] }
 0x124   : > { %v855_v14 = vpop.f32.mrf.mxu1 }
 0x125   : > { %v6318_v48 = vadd.f32 %v4784_v47, %v861_v57  ;;  %v856_v11 = vadd.f32 %v855_v14, %v6077_v60  ;;  %v4787_v51 = vpop.f32.mrf.mxu0  ;;  %5086 = vmatmul.mubr.msk.f32.gmra.mxu0 %vm281_vm0, %v6968_v5  ;;  %v6988_v57 = vld [vmem:[#allocation36_spill] sm:$0xff] }
 0x126   : > { %v4737_v0 = vpop.f32.mrf.mxu1  ;;  %5036 = vmatmul.mubr.msk.f32.gmra.mxu1 %vm281_vm0, %v4240_v32  ;;  %5088 = vmatprep.mubr.msk.f32.mxu0 %vm281_vm0, %v6969_v58  ;;  %v6989_v32 = vld [vmem:[#allocation10_spill] sm:$0xff] }
 0x127   : > { %v6324_v53 = vadd.f32 %v1210_v49, %v856_v11  ;;  %v871_v62 = vadd.f32 %v4737_v0, %v6081_v63  ;;  %5038 = vmatprep.mubr.msk.f32.mxu1 %vm281_vm0, %v4241_v21  ;;  %v1220_v60 = vpop.f32.mrf.mxu0  ;;  %v4249_v21 = vld [vmem:[%s5333_s9 + $0x199] sm:$0xff] }
 0x128   : > { %v865_v23 = vpop.f32.mrf.mxu1  ;;  %v4314_v11 = vld [vmem:[%s5333_s9 + $0x19a] sm:$0xff] }
 0x129   : > { %v6332_v26 = vadd.f32 %v4787_v51, %v871_v62  ;;  %v866_v5 = vadd.f32 %v865_v23, %v6093_v1  ;;  %v4790_v42 = vpop.f32.mrf.mxu0  ;;  %5089 = vmatmul.mubr.msk.f32.gmra.mxu0 %vm281_vm0, %v6971_v38  ;;  %v6990_v51 = vld [vmem:[#allocation9_spill] sm:$0xff] }
 0x12a   : > { %v4740_v46 = vpop.f32.mrf.mxu1  ;;  %5039 = vmatmul.mubr.msk.f32.gmra.mxu1 %vm281_vm0, %v4242_v33  ;;  %5091 = vmatprep.mubr.msk.f32.mxu0 %vm281_vm0, %v6972_v54  ;;  %v6985_v54 = vld [vmem:[#allocation6_spill] sm:$0xff] }
 0x12b   : > { %v6338_v63 = vadd.f32 %v1220_v60, %v866_v5  ;;  %v881_v58 = vadd.f32 %v4740_v46, %v6097_v3  ;;  %5041 = vmatprep.mubr.msk.f32.mxu1 %vm281_vm0, %v4243_v34  ;;  %v1230_v56 = vpop.f32.mrf.mxu0  ;;  %v6984_v3 = vld [vmem:[#allocation33_spill] sm:$0xff]  ;;  %v6992_v34 = vld [vmem:[#allocation12_spill] sm:$0xff]  ;;  %v6993_v46 = vld [vmem:[#allocation11_spill] sm:$0xff] }
 0x12c   : > { %v875_v1 = vpop.f32.mrf.mxu1  ;;  %v6991_v60 = vld [vmem:[#allocation5_spill] sm:$0xff] }
 0x12d   : > { %v6347_v36 = vadd.f32 %v4790_v42, %v881_v58  ;;  %v876_v38 = vadd.f32 %v875_v1, %v6109_v9  ;;  %v4793_v27 = vpop.f32.mrf.mxu0  ;;  %5092 = vmatmul.mubr.msk.f32.gmra.mxu0 %vm281_vm0, %v6984_v3  ;;  %v4250_v58 = vld [vmem:[%s5333_s9 + $0x1a1] sm:$0xff] }
 0x12e   : > { %v4743_v37 = vpop.f32.mrf.mxu1  ;;  %5042 = vmatmul.mubr.msk.f32.gmra.mxu1 %vm281_vm0, %v4244_v28  ;;  %5094 = vmatprep.mubr.msk.f32.mxu0 %vm281_vm0, %v4310_v8  ;;  %v4315_v28 = vld [vmem:[%s5333_s9 + $0x1a2] sm:$0xff]  ;;  %s6650_s9 = scalar_lea.vmem [#allocation2], %s3859_s6 }
 0x12f   : > { %v6353_v50 = vadd.f32 %v1230_v56, %v876_v38  ;;  %v891_v29 = vadd.f32 %v4743_v37, %v6985_v54  ;;  %5044 = vmatprep.mubr.msk.f32.mxu1 %vm281_vm0, %v4245_v35  ;;  %v1240_v16 = vpop.f32.mrf.mxu0  ;;  %v6994_v8 = vld [vmem:[#allocation13_spill] sm:$0xff]  ;;  %v6995_v54 = vld [vmem:[#allocation14_spill] sm:$0xff]  ;;  %s3753_s11 = sshll.u32 %s6650_s9, 4  ;;  %s6793_s11 = int_to_ptr.vmem [resolvable:$true] %s3753_s11 }
 0x130   : > { %v885_v9 = vpop.f32.mrf.mxu1  ;;  %s5163_s23 = scalar_lea.vmem %s6793_s11, 4096  ;;  %p5170_p1 = scmp.lt.s32.totalorder %s6793_s11, %s5168_s27 }
 0x131   : > { %v6360_v45 = vadd.f32 %v4793_v27, %v891_v29  ;;  %v886_v52 = vadd.f32 %v885_v9, %v6986_v17  ;;  %v4796_v18 = vpop.f32.mrf.mxu0  ;;  %5095 = vmatmul.mubr.msk.f32.gmra.mxu0 %vm281_vm0, %v4311_v44  ;;  %p5164_p12 = scmp.ne.s32.totalorder %s6793_s11, %s5163_s23  ;;  %p5171_p2 = scmp.lt.s32.totalorder %s5169_s28, %s5163_s23 }
 0x132   : > { %v4746_v6 = vpop.f32.mrf.mxu1  ;;  %5045 = vmatmul.mubr.msk.f32.gmra.mxu1 %vm281_vm0, %v4246_v30  ;;  %5097 = vmatprep.mubr.msk.f32.mxu0 %vm281_vm0, %v6989_v32 }
 0x133   : > { %v6365_v31 = vadd.f32 %v1240_v16, %v886_v52  ;;  %v901_v47 = vadd.f32 %v4746_v6, %v6987_v55  ;;  %5047 = vmatprep.mubr.msk.f32.mxu1 %vm281_vm0, %v6988_v57  ;;  %v1250_v49 = vpop.f32.mrf.mxu0  ;;  %v6996_v16 = vld [vmem:[#allocation15_spill] sm:$0xff]  ;;  %p5165_p13 = pnand %p5164_p12, %p5304_p4  ;;  %p5172_p3 = por %p5171_p2, %p5170_p1 }
 0x134   : > { %v895_v14 = vpop.f32.mrf.mxu1 }
 0x135   : > { %v6374_v0 = vadd.f32 %v4796_v18, %v901_v47  ;;  %v896_v62 = vadd.f32 %v895_v14, %v6990_v51  ;;  %v4799_v23 = vpop.f32.mrf.mxu0  ;;  %5098 = vmatmul.mubr.msk.f32.gmra.mxu0 %vm281_vm0, %v6992_v34  ;;  %p5166_p0 = pneg %p5165_p13 }
 0x136   : > { %v4749_v33 = vpop.f32.mrf.mxu1  ;;  %5048 = vmatmul.mubr.msk.f32.gmra.mxu1 %vm281_vm0, %v6991_v60  ;;  %5100 = vmatprep.mubr.msk.f32.mxu0 %vm281_vm0, %v4314_v11 }
 0x137   : > { %v6381_v5 = vadd.f32 %v1250_v49, %v896_v62  ;;  %v911_v42 = vadd.f32 %v4749_v33, %v6993_v46  ;;  %5050 = vmatprep.mubr.msk.f32.mxu1 %vm281_vm0, %v4249_v21  ;;  %v1260_v56 = vpop.f32.mrf.mxu0  ;;  %p5173_p5 = pnand %p5172_p3, %p5166_p0 }
 0x138   : > { %v905_v1 = vpop.f32.mrf.mxu1 }
 0x139   : > { %v6388_v35 = vadd.f32 %v4799_v23, %v911_v42  ;;  %v906_v38 = vadd.f32 %v905_v1, %v6994_v8  ;;  %v4802_v27 = vpop.f32.mrf.mxu0  ;;  %5101 = vmatmul.mubr.msk.f32.gmra.mxu0 %vm281_vm0, %v4315_v28 }
 0x13a   : > { %v4752_v37 = vpop.f32.mrf.mxu1  ;;  %5051 = vmatmul.mubr.msk.f32.gmra.mxu1 %vm281_vm0, %v4250_v58 }
 0x13b   : > { %v6393_v3 = vadd.f32 %v1260_v56, %v906_v38  ;;  %v921_v29 = vadd.f32 %v4752_v37, %v6995_v54  ;;  %v1270_v44 = vpop.f32.mrf.mxu0 }
 0x13c   : > { %v915_v30 = vpop.f32.mrf.mxu1 }
 0x13d   : > { %v6396_v9 = vadd.f32 %v4802_v27, %v921_v29  ;;  %v916_v17 = vadd.f32 %v915_v30, %v6996_v16  ;;  %v4857_v6 = vpop.f32.mrf.mxu0 }
 0x13e   : > { %v4807_v52 = vpop.f32.mrf.mxu1 }
 0x13f   : > { %v6399_v18 = vadd.f32 %v1270_v44, %v916_v17  ;;  %v1668_v55 = vadd.f32 %v4807_v52, %v6190_v39  ;;  %v1895_v57 = vpop.f32.mrf.mxu0 }
 0x140   : > { %v1508_v47 = vpop.f32.mrf.mxu1 }
 0x141   : > { %v6402_v32 = vadd.f32 %v4857_v6, %v1668_v55  ;;  %v1667_v14 = vadd.f32 %v1508_v47, %v6197_v15  ;;  %v4860_v21 = vpop.f32.mrf.mxu0 }
 0x142   : > { %v4810_v49 = vpop.f32.mrf.mxu1 }
 0x143   : > { %v6405_v11 = vadd.f32 %v1895_v57, %v1667_v14  ;;  %v1670_v51 = vadd.f32 %v4810_v49, %v6204_v41  ;;  %v1905_v33 = vpop.f32.mrf.mxu0 }
 0x144   : > { %v1518_v62 = vpop.f32.mrf.mxu1 }
 0x145   : > { %v6408_v23 = vadd.f32 %v4860_v21, %v1670_v51  ;;  %v1669_v60 = vadd.f32 %v1518_v62, %v6211_v22  ;;  %v4863_v39 = vpop.f32.mrf.mxu0 }
 0x146   : > { %v4813_v34 = vpop.f32.mrf.mxu1 }
 0x147   : > { %v6411_v46 = vadd.f32 %v1905_v33, %v1669_v60  ;;  %v1672_v42 = vadd.f32 %v4813_v34, %v6219_v59  ;;  %v1915_v15 = vpop.f32.mrf.mxu0 }
 0x148   : > { %v1528_v58 = vpop.f32.mrf.mxu1 }
 0x149   : > { %v6414_v28 = vadd.f32 %v4863_v39, %v1672_v42  ;;  %v1671_v1 = vadd.f32 %v1528_v58, %v6226_v25  ;;  %v4866_v41 = vpop.f32.mrf.mxu0 }
 0x14a   : > { %v4816_v56 = vpop.f32.mrf.mxu1 }
 0x14b   : > { %v6417_v8 = vadd.f32 %v1915_v15, %v1671_v1  ;;  %v1674_v38 = vadd.f32 %v4816_v56, %v6234_v4  ;;  %v1925_v22 = vpop.f32.mrf.mxu0 }
 0x14c   : > { %v1538_v37 = vpop.f32.mrf.mxu1 }
 0x14d   : > { %v6420_v27 = vadd.f32 %v4866_v41, %v1674_v38  ;;  %v1673_v54 = vadd.f32 %v1538_v37, %v6240_v2  ;;  %v4869_v59 = vpop.f32.mrf.mxu0 }
 0x14e   : > { %v4819_v29 = vpop.f32.mrf.mxu1 }
 0x14f   : > { %v6423_v30 = vadd.f32 %v1925_v22, %v1673_v54  ;;  %v1676_v44 = vadd.f32 %v4819_v29, %v6248_v20  ;;  %v1935_v25 = vpop.f32.mrf.mxu0 }
 0x150   : > { %v1548_v16 = vpop.f32.mrf.mxu1 }
 0x151   : > { %v6426_v17 = vadd.f32 %v4869_v59, %v1676_v44  ;;  %v1675_v52 = vadd.f32 %v1548_v16, %v6254_v10  ;;  %v4872_v4 = vpop.f32.mrf.mxu0 }
 0x152   : > { %v4822_v6 = vpop.f32.mrf.mxu1 }
 0x153   : > { %v6429_v55 = vadd.f32 %v1935_v25, %v1675_v52  ;;  %v1678_v47 = vadd.f32 %v4822_v6, %v6262_v24  ;;  %v1945_v2 = vpop.f32.mrf.mxu0 }
 0x154   : > { %v1558_v57 = vpop.f32.mrf.mxu1 }
 0x155   : > { %v6432_v14 = vadd.f32 %v4872_v4, %v1678_v47  ;;  %v1677_v49 = vadd.f32 %v1558_v57, %v6268_v7  ;;  %v4875_v20 = vpop.f32.mrf.mxu0 }
 0x156   : > { %v4825_v21 = vpop.f32.mrf.mxu1 }
 0x157   : > { %v6435_v51 = vadd.f32 %v1945_v2, %v1677_v49  ;;  %v1680_v62 = vadd.f32 %v4825_v21, %v6276_v61  ;;  %v1955_v10 = vpop.f32.mrf.mxu0 }
 0x158   : > { %v1568_v33 = vpop.f32.mrf.mxu1 }
 0x159   : > { %v6438_v60 = vadd.f32 %v4875_v20, %v1680_v62  ;;  %v1679_v34 = vadd.f32 %v1568_v33, %v6282_v12  ;;  %v4878_v24 = vpop.f32.mrf.mxu0 }
 0x15a   : > { %v4828_v39 = vpop.f32.mrf.mxu1 }
 0x15b   : > { %v6441_v42 = vadd.f32 %v1955_v10, %v1679_v34  ;;  %v1682_v58 = vadd.f32 %v4828_v39, %v6290_v13  ;;  %v1965_v7 = vpop.f32.mrf.mxu0 }
 0x15c   : > { %v1578_v15 = vpop.f32.mrf.mxu1 }
 0x15d   : > { %v6444_v1 = vadd.f32 %v4878_v24, %v1682_v58  ;;  %v1681_v56 = vadd.f32 %v1578_v15, %v6296_v40  ;;  %v4881_v61 = vpop.f32.mrf.mxu0 }
 0x15e   : > { %v4831_v41 = vpop.f32.mrf.mxu1 }
 0x15f   : > { %v6447_v38 = vadd.f32 %v1965_v7, %v1681_v56  ;;  %v1684_v37 = vadd.f32 %v4831_v41, %v6304_v19  ;;  %v1975_v12 = vpop.f32.mrf.mxu0 }
 0x160   : > { %v1588_v22 = vpop.f32.mrf.mxu1 }
 0x161   : > { %v6450_v54 = vadd.f32 %v4881_v61, %v1684_v37  ;;  %v1683_v29 = vadd.f32 %v1588_v22, %v6310_v43  ;;  %v4884_v13 = vpop.f32.mrf.mxu0 }
 0x162   : > { %v4834_v59 = vpop.f32.mrf.mxu1 }
 0x163   : > { %v6453_v44 = vadd.f32 %v1975_v12, %v1683_v29  ;;  %v1686_v16 = vadd.f32 %v4834_v59, %v6318_v48  ;;  %v1985_v40 = vpop.f32.mrf.mxu0 }
 0x164   : > { %v1598_v25 = vpop.f32.mrf.mxu1 }
 0x165   : > { %v6456_v52 = vadd.f32 %v4884_v13, %v1686_v16  ;;  %v1685_v6 = vadd.f32 %v1598_v25, %v6324_v53  ;;  %v4887_v19 = vpop.f32.mrf.mxu0 }
 0x166   : > { %v4837_v4 = vpop.f32.mrf.mxu1 }
 0x167   : > { %6997 = vst [vmem:[#allocation16_spill] sm:$0xff] %v6456_v52  ;;  %v6459_v47 = vadd.f32 %v1985_v40, %v1685_v6  ;;  %v1688_v57 = vadd.f32 %v4837_v4, %v6332_v26  ;;  %v1995_v43 = vpop.f32.mrf.mxu0 }
 0x168   : > { %v1608_v2 = vpop.f32.mrf.mxu1 }
 0x169   : > { %6998 = vst [vmem:[#allocation17_spill] sm:$0xff] %v6459_v47  ;;  %v6462_v49 = vadd.f32 %v4887_v19, %v1688_v57  ;;  %v1687_v21 = vadd.f32 %v1608_v2, %v6338_v63  ;;  %v4890_v48 = vpop.f32.mrf.mxu0 }
 0x16a   : > { %v4840_v20 = vpop.f32.mrf.mxu1 }
 0x16b   : > { %6999 = vst [vmem:[#allocation18_spill] sm:$0xff] %v6462_v49  ;;  %v6465_v62 = vadd.f32 %v1995_v43, %v1687_v21  ;;  %v1690_v33 = vadd.f32 %v4840_v20, %v6347_v36  ;;  %v2005_v53 = vpop.f32.mrf.mxu0 }
 0x16c   : > { %v1618_v10 = vpop.f32.mrf.mxu1 }
 0x16d   : > { %7000 = vst [vmem:[#allocation19_spill] sm:$0xff] %v6465_v62  ;;  %v6468_v34 = vadd.f32 %v4890_v48, %v1690_v33  ;;  %v1689_v39 = vadd.f32 %v1618_v10, %v6353_v50  ;;  %v4893_v26 = vpop.f32.mrf.mxu0 }
 0x16e   : > { %v4843_v24 = vpop.f32.mrf.mxu1 }
 0x16f   : > { %7001 = vst [vmem:[#allocation20_spill] sm:$0xff] %v6468_v34  ;;  %v6471_v58 = vadd.f32 %v2005_v53, %v1689_v39  ;;  %v1692_v15 = vadd.f32 %v4843_v24, %v6360_v45  ;;  %v2015_v63 = vpop.f32.mrf.mxu0 }
 0x170   : > { %v1628_v7 = vpop.f32.mrf.mxu1 }
 0x171   : > { %7002 = vst [vmem:[#allocation21_spill] sm:$0xff] %v6471_v58  ;;  %v6474_v56 = vadd.f32 %v4893_v26, %v1692_v15  ;;  %v1691_v41 = vadd.f32 %v1628_v7, %v6365_v31  ;;  %v4896_v36 = vpop.f32.mrf.mxu0 }
 0x172   : > { %v4846_v61 = vpop.f32.mrf.mxu1 }
 0x173   : > { %7003 = vst [vmem:[#allocation22_spill] sm:$0xff] %v6474_v56  ;;  %v6477_v37 = vadd.f32 %v2015_v63, %v1691_v41  ;;  %v1694_v22 = vadd.f32 %v4846_v61, %v6374_v0  ;;  %v2025_v50 = vpop.f32.mrf.mxu0 }
 0x174   : > { %v1638_v12 = vpop.f32.mrf.mxu1 }
 0x175   : > { %7004 = vst [vmem:[#allocation23_spill] sm:$0xff] %v6477_v37  ;;  %v6480_v29 = vadd.f32 %v4896_v36, %v1694_v22  ;;  %v1693_v59 = vadd.f32 %v1638_v12, %v6381_v5  ;;  %v4899_v45 = vpop.f32.mrf.mxu0 }
 0x176   : > { %v4849_v13 = vpop.f32.mrf.mxu1 }
 0x177   : > { %7005 = vst [vmem:[#allocation24_spill] sm:$0xff] %v6480_v29  ;;  %v6483_v16 = vadd.f32 %v2025_v50, %v1693_v59  ;;  %v1696_v25 = vadd.f32 %v4849_v13, %v6388_v35  ;;  %v2035_v31 = vpop.f32.mrf.mxu0 }
 0x178   : > { %v1648_v40 = vpop.f32.mrf.mxu1 }
 0x179   : > { %7006 = vst [vmem:[#allocation25_spill] sm:$0xff] %v6483_v16  ;;  %v6486_v6 = vadd.f32 %v4899_v45, %v1696_v25  ;;  %v1695_v4 = vadd.f32 %v1648_v40, %v6393_v3  ;;  %v4902_v0 = vpop.f32.mrf.mxu0 }
 0x17a   : > { %v4852_v19 = vpop.f32.mrf.mxu1 }
 0x17b   : > { %7007 = vst [vmem:[#allocation26_spill] sm:$0xff] %v6486_v6  ;;  %v6489_v57 = vadd.f32 %v2035_v31, %v1695_v4  ;;  %v1698_v2 = vadd.f32 %v4852_v19, %v6396_v9  ;;  %v2045_v5 = vpop.f32.mrf.mxu0 }
 0x17c   : > { %v1658_v43 = vpop.f32.mrf.mxu1 }
 0x17d   : > { %7008 = vst [vmem:[#allocation27_spill] sm:$0xff] %v6489_v57  ;;  %v6492_v21 = vadd.f32 %v4902_v0, %v1698_v2  ;;  %v1697_v20 = vadd.f32 %v1658_v43, %v6399_v18  ;;  %v6495_v35 = vpop.f32.mrf.mxu0 }
 0x17e   : > { %v4907_v48 = vpop.f32.mrf.mxu1 }
 0x17f   : > { %7009 = vst [vmem:[#allocation28_spill] sm:$0xff] %v6492_v21  ;;  %v6497_v33 = vadd.f32 %v2045_v5, %v1697_v20  ;;  %v6499_v53 = vpop.f32.mrf.mxu0 }
 0x180   : > { %v2282_v10 = vpop.f32.mrf.mxu1 }
 0x181   : > { %7010 = vst [vmem:[#allocation29_spill] sm:$0xff] %v6497_v33  ;;  %v6503_v39 = vpop.f32.mrf.mxu0 }
 0x182   : > { %v6501_v3 = vpop.f32.mrf.mxu1 }
 0x183   : > { %v6507_v9 = vpop.f32.mrf.mxu0 }
 0x184   : > { %v6505_v24 = vpop.f32.mrf.mxu1 }
 0x185   : > { %v6511_v15 = vpop.f32.mrf.mxu0 }
 0x186   : > { %v6509_v26 = vpop.f32.mrf.mxu1 }
 0x187   : > { %v6515_v7 = vpop.f32.mrf.mxu0 }
 0x188   : > { %v6513_v18 = vpop.f32.mrf.mxu1 }
 0x189   : > { %v6519_v41 = vpop.f32.mrf.mxu0 }
 0x18a   : > { %v6517_v63 = vpop.f32.mrf.mxu1 }
 0x18b   : > { %v6523_v36 = vpop.f32.mrf.mxu0 }
 0x18c   : > { %v6521_v61 = vpop.f32.mrf.mxu1 }
 0x18d   : > { %v6527_v12 = vpop.f32.mrf.mxu0 }
 0x18e   : > { %v6525_v22 = vpop.f32.mrf.mxu1 }
 0x18f   : > { %v6531_v59 = vpop.f32.mrf.mxu0 }
 0x190   : > { %v6529_v50 = vpop.f32.mrf.mxu1 }
 0x191   : > { %v6535_v45 = vpop.f32.mrf.mxu0 }
 0x192   : > { %v6533_v13 = vpop.f32.mrf.mxu1 }
 0x193   : > { %v6539_v40 = vpop.f32.mrf.mxu0 }
 0x194   : > { %v6537_v25 = vpop.f32.mrf.mxu1 }
 0x195   : > { %v6543_v4 = vpop.f32.mrf.mxu0 }
 0x196   : > { %v6541_v31 = vpop.f32.mrf.mxu1 }
 0x197   : > { %v6547_v0 = vpop.f32.mrf.mxu0 }
 0x198   : > { %v6545_v19 = vpop.f32.mrf.mxu1 }
 0x199   : > { %v6551_v43 = vpop.f32.mrf.mxu0 }
 0x19a   : > { %v6549_v2 = vpop.f32.mrf.mxu1 }
 0x19b   : > { %v6555_v20 = vpop.f32.mrf.mxu0 }
 0x19c   : > { %v6553_v5 = vpop.f32.mrf.mxu1 }
 0x19d   : > { %v6559_v21 = vpop.f32.mrf.mxu0 }
 0x19e   : > { %v6557_v33 = vpop.f32.mrf.mxu1 }
 0x19f   : > { %v6563_v6 = vpop.f32.mrf.mxu0 }
 0x1a0   : > { %v6561_v57 = vpop.f32.mrf.mxu1  ;;  %7011 = vst [vmem:[#allocation30_spill] sm:$0xff] %v6563_v6 }
 0x1a1   : > { %v6567_v29 = vpop.f32.mrf.mxu0 }
 0x1a2   : > { %v6565_v16 = vpop.f32.mrf.mxu1  ;;  %7013 = vst [vmem:[#allocation32_spill] sm:$0xff] %v6567_v29 }
 0x1a3   : > { %7012 = vst [vmem:[#allocation31_spill] sm:$0xff] %v6565_v16  ;;  %v6571_v56 = vpop.f32.mrf.mxu0 }
 0x1a4   : > { %v6569_v37 = vpop.f32.mrf.mxu1  ;;  %7015 = vst [vmem:[#allocation35_spill] sm:$0xff] %v6571_v56 }
 0x1a5   : > { %7014 = vst [vmem:[#allocation34_spill] sm:$0xff] %v6569_v37  ;;  %v6575_v34 = vpop.f32.mrf.mxu0 }
 0x1a6   : > { %v6573_v58 = vpop.f32.mrf.mxu1  ;;  %7017 = vst [vmem:[#allocation6_spill] sm:$0xff] %v6575_v34 }
 0x1a7   : > { %7016 = vst [vmem:[#allocation33_spill] sm:$0xff] %v6573_v58  ;;  %v6579_v49 = vpop.f32.mrf.mxu0 }
 0x1a8   : > { %v6577_v62 = vpop.f32.mrf.mxu1  ;;  %7019 = vst [vmem:[#allocation8_spill] sm:$0xff] %v6579_v49 }
 0x1a9   : > { %7018 = vst [vmem:[#allocation7_spill] sm:$0xff] %v6577_v62  ;;  %v6583_v52 = vpop.f32.mrf.mxu0 }
 0x1aa   : > { %v6581_v47 = vpop.f32.mrf.mxu1  ;;  %7020 = vst [vmem:[#allocation36_spill] sm:$0xff] %v6583_v52 }
 0x1ab   : > { %v6587_v16 = vpop.f32.mrf.mxu0 }
 0x1ac   : > { %v6585_v6 = vpop.f32.mrf.mxu1  ;;  %7022 = vst [vmem:[#allocation9_spill] sm:$0xff] %v6587_v16 }
 0x1ad   : > { %7021 = vst [vmem:[#allocation10_spill] sm:$0xff] %v6585_v6  ;;  %v6591_v37 = vpop.f32.mrf.mxu0 }
 0x1ae   : > { %v6589_v29 = vpop.f32.mrf.mxu1  ;;  %7024 = vst [vmem:[#allocation12_spill] sm:$0xff] %v6591_v37 }
 0x1af   : > { %7023 = vst [vmem:[#allocation5_spill] sm:$0xff] %v6589_v29  ;;  %v6595_v58 = vpop.f32.mrf.mxu0 }
 0x1b0   : > { %v6593_v56 = vpop.f32.mrf.mxu1  ;;  %7026 = vst [vmem:[#allocation13_spill] sm:$0xff] %v6595_v58 }
 0x1b1   : > { %7025 = vst [vmem:[#allocation11_spill] sm:$0xff] %v6593_v56  ;;  %v6599_v62 = vpop.f32.mrf.mxu0  ;;  %v2442_v56 = vadd.f32 %v4907_v48, %v6402_v32  ;;  %v2443_v48 = vadd.f32 %v6505_v24, %v6411_v46 }
 0x1b2   : > { %v6597_v34 = vpop.f32.mrf.mxu1  ;;  %7028 = vst [vmem:[#allocation15_spill] sm:$0xff] %v6599_v62  ;;  %v2441_v62 = vadd.f32 %v2282_v10, %v6405_v11  ;;  %v2446_v11 = vadd.f32 %v6509_v26, %v6414_v28 }
 0x1b3   : > { %7027 = vst [vmem:[#allocation14_spill] sm:$0xff] %v6597_v34  ;;  %v6603_v52 = vpop.f32.mrf.mxu0  ;;  %v2831_v28 = vadd.f32 %v6507_v9, %v2443_v48  ;;  %v2447_v9 = vadd.f32 %v6521_v61, %v6423_v30 }
 0x1b4   : > { %v6601_v49 = vpop.f32.mrf.mxu1  ;;  %7030 = vst [vmem:[#allocation38_spill] sm:$0xff] %v6603_v52  ;;  %v2829_v32 = vadd.f32 %v6499_v53, %v2441_v62  ;;  %v6640_v62 = vld [vmem:[%s6847_s2] ss:$0 sm:$0xff] }
 0x1b5   : > { %7029 = vst [vmem:[#allocation37_spill] sm:$0xff] %v6601_v49  ;;  %v6607_v16 = vpop.f32.mrf.mxu0 }
 0x1b6   : > { %v6605_v6 = vpop.f32.mrf.mxu1  ;;  %7032 = vst [vmem:[#allocation40_spill] sm:$0xff] %v6607_v16  ;;  %v2444_v16 = vadd.f32 %v6501_v3, %v6408_v23 }
 0x1b7   : > { %7031 = vst [vmem:[#allocation39_spill] sm:$0xff] %v6605_v6  ;;  %v6611_v37 = vpop.f32.mrf.mxu0  ;;  %v2830_v6 = vadd.f32 %v6495_v35, %v2442_v56  ;;  %v2445_v35 = vadd.f32 %v6513_v18, %v6417_v8 }
 0x1b8   : > { %v6609_v29 = vpop.f32.mrf.mxu1  ;;  %7034 = vst [vmem:[#allocation42_spill] sm:$0xff] %v6611_v37 }
 0x1b9   : > { %7033 = vst [vmem:[#allocation41_spill] sm:$0xff] %v6609_v29  ;;  %v6616_v34 = vpop.f32.mrf.mxu0 }
 0x1ba   : > { %v6614_v58 = vpop.f32.mrf.mxu1  ;;  %7035 = vst [vmem:[#allocation43_spill] sm:$0xff] %v6616_v34 }
 0x1bb   : > { %v6621_v52 = vpop.f32.mrf.mxu0 }
 0x1bc   : > { %v6619_v49 = vpop.f32.mrf.mxu1  ;;  %7037 = vst [vmem:[#allocation45_spill] sm:$0xff] %v6621_v52  ;;  %v2832_v52 = vadd.f32 %v6503_v39, %v2444_v16  ;;  %v2834_v16 = vadd.f32 %v6511_v15, %v2446_v11 }
 0x1bd   : > { %7036 = vst [vmem:[#allocation44_spill] sm:$0xff] %v6619_v49  ;;  %v5057_v37 = vpop.f32.mrf.mxu0 }
 0x1be   : > { %v5007_v29 = vpop.f32.mrf.mxu1 }
 0x1bf   : > { %v3217_v34 = vadd.f32 %v5007_v29, %v2830_v6  ;;  %v3444_v49 = vpop.f32.mrf.mxu0 }
 0x1c0   : > { %v3057_v10 = vpop.f32.mrf.mxu1 }
 0x1c1   : > { %v3604_v56 = vadd.f32 %v5057_v37, %v3217_v34  ;;  %v3216_v23 = vadd.f32 %v3057_v10, %v2829_v32  ;;  %v5060_v29 = vpop.f32.mrf.mxu0  ;;  %v2448_v34 = vadd.f32 %v6517_v63, %v6420_v27  ;;  %v2833_v32 = vadd.f32 %v6515_v7, %v2445_v35 }
 0x1c2   : > { %v5010_v46 = vpop.f32.mrf.mxu1  ;;  %v2450_v7 = vadd.f32 %v6525_v22, %v6426_v17 }
 0x1c3   : > { %v3636_v6 = vmul.f32 0.23570226, %v3604_v56  ;;  %v3603_v53 = vadd.f32 %v3444_v49, %v3216_v23  ;;  %v3219_v3 = vadd.f32 %v5010_v46, %v2832_v52  ;;  %v3454_v39 = vpop.f32.mrf.mxu0  ;;  %v2836_v11 = vadd.f32 %v6519_v41, %v2448_v34 }
 0x1c4   : > { %v3067_v37 = vpop.f32.mrf.mxu1  ;;  %v2835_v46 = vadd.f32 %v6523_v36, %v2447_v9 }
 0x1c5   : > { %v3675_v8 = vadd.f32 %v6640_v62, %v3636_v6  ;;  %v3635_v24 = vmul.f32 0.23570226, %v3603_v53  ;;  %v3606_v26 = vadd.f32 %v5060_v29, %v3219_v3  ;;  %v3218_v18 = vadd.f32 %v3067_v37, %v2831_v28  ;;  %v5063_v49 = vpop.f32.mrf.mxu0 }
 0x1c6   : > { %v5013_v48 = vpop.f32.mrf.mxu1  ;;  %v2449_v29 = vadd.f32 %v6529_v50, %v6429_v55  ;;  %v2838_v3 = vadd.f32 %v6527_v12, %v2450_v7 }
 0x1c7   : > { %3707 = vst [vmem:[%s6650_s9 + $0x8] sm:$0xff] %v3675_v8  ;;  %v3674_v27 = vadd.f32 %v6640_v62, %v3635_v24  ;;  %v3638_v52 = vmul.f32 0.23570226, %v3606_v26  ;;  %v3605_v15 = vadd.f32 %v3454_v39, %v3218_v18  ;;  %v3221_v63 = vadd.f32 %v5013_v48, %v2834_v16  ;;  %v3464_v30 = vpop.f32.mrf.mxu0 }
 0x1c8   : > { %v3077_v10 = vpop.f32.mrf.mxu1  ;;  %v2452_v16 = vadd.f32 %v6533_v13, %v6432_v14  ;;  %v2837_v8 = vadd.f32 %v6531_v59, %v2449_v29  ;;  %v2451_v24 = vadd.f32 %v6537_v25, %v6435_v51  ;;  %v2454_v48 = vadd.f32 %v6541_v31, %v6438_v60 }
 0x1c9   : > { %3706 = vst [vmem:[%s6650_s9] sm:$0xff] %v3674_v27  ;;  %v3677_v61 = vadd.f32 %v6640_v62, %v3638_v52  ;;  %v3637_v56 = vmul.f32 0.23570226, %v3605_v15  ;;  %v3608_v23 = vadd.f32 %v5063_v49, %v3221_v63  ;;  %v3220_v35 = vadd.f32 %v3077_v10, %v2833_v32  ;;  %v5066_v6 = vpop.f32.mrf.mxu0 }
 0x1ca   : > { %v5016_v28 = vpop.f32.mrf.mxu1  ;;  %v2840_v9 = vadd.f32 %v6535_v45, %v2452_v16  ;;  %v2839_v15 = vadd.f32 %v6539_v40, %v2451_v24  ;;  %v2453_v63 = vadd.f32 %v6545_v19, %v6441_v42  ;;  %v2455_v29 = vadd.f32 %v6553_v5, %v6447_v38  ;;  %v7039_v24 = vld [vmem:[#allocation31_spill] sm:$0xff] }
 0x1cb   : > { %3709 = vst [vmem:[%s6650_s9 + $0x18] sm:$0xff] %v3677_v61  ;;  %v3676_v41 = vadd.f32 %v6640_v62, %v3637_v56  ;;  %v3640_v17 = vmul.f32 0.23570226, %v3608_v23  ;;  %v3607_v22 = vadd.f32 %v3464_v30, %v3220_v35  ;;  %v3223_v53 = vadd.f32 %v5016_v28, %v2836_v11  ;;  %v3474_v37 = vpop.f32.mrf.mxu0 }
 0x1cc   : > { %v3087_v34 = vpop.f32.mrf.mxu1  ;;  %v2842_v30 = vadd.f32 %v6543_v4, %v2454_v48  ;;  %v2456_v61 = vadd.f32 %v6549_v2, %v6444_v1  ;;  %v7042_v48 = vld [vmem:[#allocation34_spill] sm:$0xff] }
 0x1cd   : > { %3708 = vst [vmem:[%s6650_s9 + $0x10] sm:$0xff] %v3676_v41  ;;  %v3679_v36 = vadd.f32 %v6640_v62, %v3640_v17  ;;  %v3639_v55 = vmul.f32 0.23570226, %v3607_v22  ;;  %v3610_v50 = vadd.f32 %v5066_v6, %v3223_v53  ;;  %v3222_v39 = vadd.f32 %v3087_v34, %v2835_v46  ;;  %v5069_v18 = vpop.f32.mrf.mxu0 }
 0x1ce   : > { %v5019_v26 = vpop.f32.mrf.mxu1  ;;  %v2841_v46 = vadd.f32 %v6547_v0, %v2453_v63  ;;  %v2844_v17 = vadd.f32 %v6551_v43, %v2456_v61  ;;  %v2458_v22 = vadd.f32 %v6557_v33, %v6450_v54  ;;  %v2843_v34 = vadd.f32 %v6555_v20, %v2455_v29 }
 0x1cf   : > { %3711 = vst [vmem:[%s6650_s9 + $0x28] sm:$0xff] %v3679_v36  ;;  %v3678_v12 = vadd.f32 %v6640_v62, %v3639_v55  ;;  %v3642_v14 = vmul.f32 0.23570226, %v3610_v50  ;;  %v3609_v13 = vadd.f32 %v3474_v37, %v3222_v39  ;;  %v3225_v32 = vadd.f32 %v5019_v26, %v2838_v3  ;;  %v3484_v27 = vpop.f32.mrf.mxu0 }
 0x1d0   : > { %v3097_v49 = vpop.f32.mrf.mxu1  ;;  %v2457_v37 = vadd.f32 %v6561_v57, %v6453_v44  ;;  %v2846_v39 = vadd.f32 %v6559_v21, %v2458_v22 }
 0x1d1   : > { %3710 = vst [vmem:[%s6650_s9 + $0x20] sm:$0xff] %v3678_v12  ;;  %v3681_v59 = vadd.f32 %v6640_v62, %v3642_v14  ;;  %v3641_v51 = vmul.f32 0.23570226, %v3609_v13  ;;  %v3612_v25 = vadd.f32 %v5069_v18, %v3225_v32  ;;  %v3224_v52 = vadd.f32 %v3097_v49, %v2837_v8  ;;  %v5072_v7 = vpop.f32.mrf.mxu0  ;;  %v7038_v8 = vld [vmem:[#allocation16_spill] sm:$0xff]  ;;  %v7040_v13 = vld [vmem:[#allocation30_spill] sm:$0xff] }
 0x1d2   : > { %v5022_v11 = vpop.f32.mrf.mxu1  ;;  %v2460_v26 = vadd.f32 %v7039_v24, %v7038_v8  ;;  %v2845_v32 = vadd.f32 %v7040_v13, %v2457_v37  ;;  %v7054_v24 = vld [vmem:[#allocation36_spill] sm:$0xff] }
 0x1d3   : > { %3713 = vst [vmem:[%s6650_s9 + $0x38] sm:$0xff] %v3681_v59  ;;  %v3680_v45 = vadd.f32 %v6640_v62, %v3641_v51  ;;  %v3644_v60 = vmul.f32 0.23570226, %v3612_v25  ;;  %v3611_v31 = vadd.f32 %v3484_v27, %v3224_v52  ;;  %v3227_v10 = vadd.f32 %v5022_v11, %v2840_v9  ;;  %v3494_v23 = vpop.f32.mrf.mxu0  ;;  %v7041_v9 = vld [vmem:[#allocation17_spill] sm:$0xff]  ;;  %v7044_v11 = vld [vmem:[#allocation18_spill] sm:$0xff] }
 0x1d4   : > { %v3107_v56 = vpop.f32.mrf.mxu1  ;;  %v2459_v49 = vadd.f32 %v7042_v48, %v7041_v9  ;;  %v7057_v48 = vld [vmem:[#allocation9_spill] sm:$0xff] }
 0x1d5   : > { %3712 = vst [vmem:[%s6650_s9 + $0x30] sm:$0xff] %v3680_v45  ;;  %v3683_v40 = vadd.f32 %v6640_v62, %v3644_v60  ;;  %v3643_v42 = vmul.f32 0.23570226, %v3611_v31  ;;  %v3614_v19 = vadd.f32 %v5072_v7, %v3227_v10  ;;  %v3226_v35 = vadd.f32 %v3107_v56, %v2839_v15  ;;  %v5075_v6 = vpop.f32.mrf.mxu0  ;;  %v7043_v15 = vld [vmem:[#allocation32_spill] sm:$0xff]  ;;  %v7045_v7 = vld [vmem:[#allocation33_spill] sm:$0xff] }
 0x1d6   : > { %v5025_v28 = vpop.f32.mrf.mxu1  ;;  %v2848_v63 = vadd.f32 %v7043_v15, %v2460_v26  ;;  %v2462_v45 = vadd.f32 %v7045_v7, %v7044_v11  ;;  %v7060_v7 = vld [vmem:[#allocation12_spill] sm:$0xff] }
 0x1d7   : > { %3715 = vst [vmem:[%s6650_s9 + $0x48] sm:$0xff] %v3683_v40  ;;  %v3682_v4 = vadd.f32 %v6640_v62, %v3643_v42  ;;  %v3646_v1 = vmul.f32 0.23570226, %v3614_v19  ;;  %v3613_v2 = vadd.f32 %v3494_v23, %v3226_v35  ;;  %v3229_v41 = vadd.f32 %v5025_v28, %v2842_v30  ;;  %v3504_v3 = vpop.f32.mrf.mxu0  ;;  %v7046_v23 = vld [vmem:[#allocation35_spill] sm:$0xff] }
 0x1d8   : > { %v3117_v53 = vpop.f32.mrf.mxu1  ;;  %v2847_v40 = vadd.f32 %v7046_v23, %v2459_v49  ;;  %v7047_v42 = vld [vmem:[#allocation19_spill] sm:$0xff] }
 0x1d9   : > { %3714 = vst [vmem:[%s6650_s9 + $0x40] sm:$0xff] %v3682_v4  ;;  %v3685_v0 = vadd.f32 %v6640_v62, %v3646_v1  ;;  %v3645_v38 = vmul.f32 0.23570226, %v3613_v2  ;;  %v3616_v5 = vadd.f32 %v5075_v6, %v3229_v41  ;;  %v3228_v16 = vadd.f32 %v3117_v53, %v2841_v46  ;;  %v5078_v55 = vpop.f32.mrf.mxu0  ;;  %v7048_v19 = vld [vmem:[#allocation7_spill] sm:$0xff]  ;;  %v7049_v2 = vld [vmem:[#allocation6_spill] sm:$0xff] }
 0x1da   : > { %v5028_v36 = vpop.f32.mrf.mxu1  ;;  %v2461_v35 = vadd.f32 %v7048_v19, %v7047_v42  ;;  %v2850_v41 = vadd.f32 %v7049_v2, %v2462_v45  ;;  %v7063_v19 = vld [vmem:[#allocation13_spill] sm:$0xff] }
 0x1db   : > { %3717 = vst [vmem:[%s6650_s9 + $0x58] sm:$0xff] %v3685_v0  ;;  %v3684_v43 = vadd.f32 %v6640_v62, %v3645_v38  ;;  %v3648_v54 = vmul.f32 0.23570226, %v3616_v5  ;;  %v3615_v33 = vadd.f32 %v3504_v3, %v3228_v16  ;;  %v3231_v50 = vadd.f32 %v5028_v36, %v2844_v17  ;;  %v3514_v12 = vpop.f32.mrf.mxu0  ;;  %v7050_v17 = vld [vmem:[#allocation20_spill] sm:$0xff]  ;;  %v7052_v36 = vld [vmem:[#allocation21_spill] sm:$0xff] }
 0x1dc   : > { %v3127_v18 = vpop.f32.mrf.mxu1  ;;  %v2464_v22 = vadd.f32 %v6581_v47, %v7050_v17 }
 0x1dd   : > { %3716 = vst [vmem:[%s6650_s9 + $0x50] sm:$0xff] %v3684_v43  ;;  %v3687_v20 = vadd.f32 %v6640_v62, %v3648_v54  ;;  %v3647_v44 = vmul.f32 0.23570226, %v3615_v33  ;;  %v3618_v57 = vadd.f32 %v5078_v55, %v3231_v50  ;;  %v3230_v14 = vadd.f32 %v3127_v18, %v2843_v34  ;;  %v5081_v59 = vpop.f32.mrf.mxu0  ;;  %v7051_v34 = vld [vmem:[#allocation8_spill] sm:$0xff]  ;;  %v7053_v55 = vld [vmem:[#allocation10_spill] sm:$0xff] }
 0x1de   : > { %v5031_v27 = vpop.f32.mrf.mxu1  ;;  %v2849_v37 = vadd.f32 %v7051_v34, %v2461_v35  ;;  %v2463_v43 = vadd.f32 %v7053_v55, %v7052_v36  ;;  %v2852_v26 = vadd.f32 %v7054_v24, %v2464_v22  ;;  %v7055_v18 = vld [vmem:[#allocation22_spill] sm:$0xff]  ;;  %v7066_v22 = vld [vmem:[#allocation15_spill] sm:$0xff] }
 0x1df   : > { %3719 = vst [vmem:[%s6650_s9 + $0x68] sm:$0xff] %v3687_v20  ;;  %v3686_v21 = vadd.f32 %v6640_v62, %v3647_v44  ;;  %v3650_v51 = vmul.f32 0.23570226, %v3618_v57  ;;  %v3617_v25 = vadd.f32 %v3514_v12, %v3230_v14  ;;  %v3233_v52 = vadd.f32 %v5031_v27, %v2846_v39  ;;  %v3524_v31 = vpop.f32.mrf.mxu0  ;;  %v7056_v12 = vld [vmem:[#allocation5_spill] sm:$0xff]  ;;  %v7058_v27 = vld [vmem:[#allocation23_spill] sm:$0xff] }
 0x1e0   : > { %v3137_v60 = vpop.f32.mrf.mxu1  ;;  %v2466_v20 = vadd.f32 %v7056_v12, %v7055_v18  ;;  %v2851_v49 = vadd.f32 %v7057_v48, %v2463_v43  ;;  %v7069_v43 = vld [vmem:[#allocation38_spill] sm:$0xff] }
 0x1e1   : > { %3718 = vst [vmem:[%s6650_s9 + $0x60] sm:$0xff] %v3686_v21  ;;  %v3689_v10 = vadd.f32 %v6640_v62, %v3650_v51  ;;  %v3649_v30 = vmul.f32 0.23570226, %v3617_v25  ;;  %v3620_v61 = vadd.f32 %v5081_v59, %v3233_v52  ;;  %v3232_v56 = vadd.f32 %v3137_v60, %v2845_v32  ;;  %v5084_v29 = vpop.f32.mrf.mxu0  ;;  %v7059_v59 = vld [vmem:[#allocation11_spill] sm:$0xff]  ;;  %v7061_v60 = vld [vmem:[#allocation24_spill] sm:$0xff] }
 0x1e2   : > { %v5034_v46 = vpop.f32.mrf.mxu1  ;;  %v2465_v21 = vadd.f32 %v7059_v59, %v7058_v27  ;;  %v2854_v45 = vadd.f32 %v7060_v7, %v2466_v20  ;;  %v7072_v20 = vld [vmem:[#allocation40_spill] sm:$0xff]  ;;  %v7074_v59 = vld [vmem:[#allocation42_spill] sm:$0xff] }
 0x1e3   : > { %3721 = vst [vmem:[%s6650_s9 + $0x78] sm:$0xff] %v3689_v10  ;;  %v3688_v28 = vadd.f32 %v6640_v62, %v3649_v30  ;;  %v3652_v6 = vmul.f32 0.23570226, %v3620_v61  ;;  %v3619_v4 = vadd.f32 %v3524_v31, %v3232_v56  ;;  %v3235_v1 = vadd.f32 %v5034_v46, %v2848_v63  ;;  %v3534_v3 = vpop.f32.mrf.mxu0  ;;  %v7062_v31 = vld [vmem:[#allocation14_spill] sm:$0xff]  ;;  %v7064_v46 = vld [vmem:[#allocation25_spill] sm:$0xff] }
 0x1e4   : > { %v3147_v53 = vpop.f32.mrf.mxu1  ;;  %v2468_v10 = vadd.f32 %v7062_v31, %v7061_v60  ;;  %v2853_v35 = vadd.f32 %v7063_v19, %v2465_v21  ;;  %v7077_v60 = vld [vmem:[#allocation43_spill] sm:$0xff] }
 0x1e5   : > { %3720 = vst [vmem:[%s6650_s9 + $0x70] sm:$0xff] %v3688_v28  ;;  %v3691_v0 = vadd.f32 %v6640_v62, %v3652_v6  ;;  %v3651_v38 = vmul.f32 0.23570226, %v3619_v4  ;;  %v3622_v5 = vadd.f32 %v5084_v29, %v3235_v1  ;;  %v3234_v16 = vadd.f32 %v3147_v53, %v2847_v40  ;;  %v5087_v33 = vpop.f32.mrf.mxu0  ;;  %v7065_v29 = vld [vmem:[#allocation37_spill] sm:$0xff] }
 0x1e6   : > { %v5037_v54 = vpop.f32.mrf.mxu1  ;;  %v2467_v28 = vadd.f32 %v7065_v29, %v7064_v46  ;;  %v2856_v53 = vadd.f32 %v7066_v22, %v2468_v10 }
 0x1e7   : > { %3723 = vst [vmem:[%s6650_s9 + $0x88] sm:$0xff] %v3691_v0  ;;  %v3690_v50 = vadd.f32 %v6640_v62, %v3651_v38  ;;  %v3654_v47 = vmul.f32 0.23570226, %v3622_v5  ;;  %v3621_v39 = vadd.f32 %v3534_v3, %v3234_v16  ;;  %v3237_v8 = vadd.f32 %v5037_v54, %v2850_v41  ;;  %v3544_v57 = vpop.f32.mrf.mxu0  ;;  %v7067_v3 = vld [vmem:[#allocation26_spill] sm:$0xff]  ;;  %v7068_v0 = vld [vmem:[#allocation39_spill] sm:$0xff] }
 0x1e8   : > { %v3157_v44 = vpop.f32.mrf.mxu1  ;;  %v2470_v38 = vadd.f32 %v7068_v0, %v7067_v3  ;;  %v2855_v54 = vadd.f32 %v7069_v43, %v2467_v28 }
 0x1e9   : > { %3722 = vst [vmem:[%s6650_s9 + $0x80] sm:$0xff] %v3690_v50  ;;  %v3693_v14 = vadd.f32 %v6640_v62, %v3654_v47  ;;  %v3653_v13 = vmul.f32 0.23570226, %v3621_v39  ;;  %v3624_v32 = vadd.f32 %v5087_v33, %v3237_v8  ;;  %v3236_v9 = vadd.f32 %v3157_v44, %v2849_v37  ;;  %v5090_v25 = vpop.f32.mrf.mxu0  ;;  %v7070_v33 = vld [vmem:[#allocation27_spill] sm:$0xff]  ;;  %v7071_v50 = vld [vmem:[#allocation41_spill] sm:$0xff] }
 0x1ea   : > { %v5040_v51 = vpop.f32.mrf.mxu1  ;;  %v2469_v47 = vadd.f32 %v7071_v50, %v7070_v33  ;;  %v2858_v44 = vadd.f32 %v7072_v20, %v2470_v38 }
 0x1eb   : > { %3725 = vst [vmem:[%s6650_s9 + $0x98] sm:$0xff] %v3693_v14  ;;  %v3692_v52 = vadd.f32 %v6640_v62, %v3653_v13  ;;  %v3656_v15 = vmul.f32 0.23570226, %v3624_v32  ;;  %v3623_v63 = vadd.f32 %v3544_v57, %v3236_v9  ;;  %v3239_v11 = vadd.f32 %v5040_v51, %v2852_v26  ;;  %v3554_v61 = vpop.f32.mrf.mxu0  ;;  %v7073_v57 = vld [vmem:[#allocation28_spill] sm:$0xff]  ;;  %v7075_v51 = vld [vmem:[#allocation29_spill] sm:$0xff] }
 0x1ec   : > { %v3167_v30 = vpop.f32.mrf.mxu1  ;;  %v2472_v14 = vadd.f32 %v6614_v58, %v7073_v57  ;;  %v2857_v21 = vadd.f32 %v7074_v59, %v2469_v47 }
 0x1ed   : > { %3724 = vst [vmem:[%s6650_s9 + $0x90] sm:$0xff] %v3692_v52  ;;  %v3695_v56 = vadd.f32 %v6640_v62, %v3656_v15  ;;  %v3655_v23 = vmul.f32 0.23570226, %v3623_v63  ;;  %v3626_v40 = vadd.f32 %v5090_v25, %v3239_v11  ;;  %v3238_v42 = vadd.f32 %v3167_v30, %v2851_v49  ;;  %v5093_v4 = vpop.f32.mrf.mxu0  ;;  %v7076_v25 = vld [vmem:[#allocation44_spill] sm:$0xff] }
 0x1ee   : > { %v5043_v6 = vpop.f32.mrf.mxu1  ;;  %v2471_v52 = vadd.f32 %v7076_v25, %v7075_v51  ;;  %v2860_v31 = vadd.f32 %v7077_v60, %v2472_v14 }
 0x1ef   : > { %3727 = vst [vmem:[%s6650_s9 + $0xa8] sm:$0xff] %v3695_v56  ;;  %v3694_v1 = vadd.f32 %v6640_v62, %v3655_v23  ;;  %v3658_v2 = vmul.f32 0.23570226, %v3626_v40  ;;  %v3625_v41 = vadd.f32 %v3554_v61, %v3238_v42  ;;  %v3241_v17 = vadd.f32 %v5043_v6, %v2854_v45  ;;  %v3564_v16 = vpop.f32.mrf.mxu0  ;;  %v7078_v42 = vld [vmem:[#allocation45_spill] sm:$0xff] }
 0x1f0   : > { %v3177_v5 = vpop.f32.mrf.mxu1  ;;  %v2859_v19 = vadd.f32 %v7078_v42, %v2471_v52 }
 0x1f1   : > { %3726 = vst [vmem:[%s6650_s9 + $0xa0] sm:$0xff] %v3694_v1  ;;  %v3697_v34 = vadd.f32 %v6640_v62, %v3658_v2  ;;  %v3657_v37 = vmul.f32 0.23570226, %v3625_v41  ;;  %v3628_v36 = vadd.f32 %v5093_v4, %v3241_v17  ;;  %v3240_v55 = vadd.f32 %v3177_v5, %v2853_v35  ;;  %v5096_v8 = vpop.f32.mrf.mxu0 }
 0x1f2   : > { %v5046_v39 = vpop.f32.mrf.mxu1 }
 0x1f3   : > { %3729 = vst [vmem:[%s6650_s9 + $0xb8] sm:$0xff] %v3697_v34  ;;  %v3696_v24 = vadd.f32 %v6640_v62, %v3657_v37  ;;  %v3660_v26 = vmul.f32 0.23570226, %v3628_v36  ;;  %v3627_v18 = vadd.f32 %v3564_v16, %v3240_v55  ;;  %v3243_v12 = vadd.f32 %v5046_v39, %v2856_v53  ;;  %v3574_v32 = vpop.f32.mrf.mxu0 }
 0x1f4   : > { %v3187_v13 = vpop.f32.mrf.mxu1 }
 0x1f5   : > { %3728 = vst [vmem:[%s6650_s9 + $0xb0] sm:$0xff] %v3696_v24  ;;  %v3699_v9 = vadd.f32 %v6640_v62, %v3660_v26  ;;  %v3659_v48 = vmul.f32 0.23570226, %v3627_v18  ;;  %v3630_v49 = vadd.f32 %v5096_v8, %v3243_v12  ;;  %v3242_v27 = vadd.f32 %v3187_v13, %v2855_v54  ;;  %v5099_v63 = vpop.f32.mrf.mxu0 }
 0x1f6   : > { %v5049_v15 = vpop.f32.mrf.mxu1 }
 0x1f7   : > { %3731 = vst [vmem:[%s6650_s9 + $0xc8] sm:$0xff] %v3699_v9  ;;  %v3698_v58 = vadd.f32 %v6640_v62, %v3659_v48  ;;  %v3662_v11 = vmul.f32 0.23570226, %v3630_v49  ;;  %v3629_v7 = vadd.f32 %v3574_v32, %v3242_v27  ;;  %v3245_v45 = vadd.f32 %v5049_v15, %v2858_v44  ;;  %v3584_v30 = vpop.f32.mrf.mxu0 }
 0x1f8   : > { %v3197_v10 = vpop.f32.mrf.mxu1 }
 0x1f9   : > { %3730 = vst [vmem:[%s6650_s9 + $0xc0] sm:$0xff] %v3698_v58  ;;  %v3701_v61 = vadd.f32 %v6640_v62, %v3662_v11  ;;  %v3661_v56 = vmul.f32 0.23570226, %v3629_v7  ;;  %v3632_v23 = vadd.f32 %v5099_v63, %v3245_v45  ;;  %v3244_v40 = vadd.f32 %v3197_v10, %v2857_v21  ;;  %v5102_v46 = vpop.f32.mrf.mxu0 }
 0x1fa   : > { %v5052_v35 = vpop.f32.mrf.mxu1 }
 0x1fb   : > { %3733 = vst [vmem:[%s6650_s9 + $0xd8] sm:$0xff] %v3701_v61  ;;  %v3700_v29 = vadd.f32 %v6640_v62, %v3661_v56  ;;  %v3664_v28 = vmul.f32 0.23570226, %v3632_v23  ;;  %v3631_v6 = vadd.f32 %v3584_v30, %v3244_v40  ;;  %v3247_v4 = vadd.f32 %v5052_v35, %v2860_v31  ;;  %v3594_v53 = vpop.f32.mrf.mxu0 }
 0x1fc   : > { %v3207_v1 = vpop.f32.mrf.mxu1 }
 0x1fd   : > { %3732 = vst [vmem:[%s6650_s9 + $0xd0] sm:$0xff] %v3700_v29  ;;  %v3703_v2 = vadd.f32 %v6640_v62, %v3664_v28  ;;  %v3663_v41 = vmul.f32 0.23570226, %v3631_v6  ;;  %v3634_v17 = vadd.f32 %v5102_v46, %v3247_v4  ;;  %v3246_v22 = vadd.f32 %v3207_v1, %v2859_v19 }
 0x1ff   : > { %3735 = vst [vmem:[%s6650_s9 + $0xe8] sm:$0xff] %v3703_v2  ;;  %v3702_v3 = vadd.f32 %v6640_v62, %v3663_v41  ;;  %v3666_v0 = vmul.f32 0.23570226, %v3634_v17  ;;  %v3633_v38 = vadd.f32 %v3594_v53, %v3246_v22 }
 0x201   : > { %3734 = vst [vmem:[%s6650_s9 + $0xe0] sm:$0xff] %v3702_v3  ;;  %v3705_v5 = vadd.f32 %v6640_v62, %v3666_v0  ;;  %v3665_v16 = vmul.f32 0.23570226, %v3633_v38 }
 0x203   : > { %3737 = vst [vmem:[%s6650_s9 + $0xf8] sm:$0xff] %v3705_v5  ;;  %v3704_v34 = vadd.f32 %v6640_v62, %v3665_v16 }
 0x205   : > { %3736 = vst [vmem:[%s6650_s9 + $0xf0] sm:$0xff] %v3704_v34 }
 0x206   : > { %5176 = shalt.err (!%p5173_p5)
}
 0x207   : > { %s5177_s29 = scalar_lea.hbm %s6791_s21, 4096  ;;  %s5181_s5 = scalar_lea.hbm %s6848_s3, 8192 }
 0x208   : > { %p5178_p6 = scmp.ne.s32.totalorder %s6791_s21, %s5177_s29  ;;  %p5182_p10 = scmp.lt.s32.totalorder %s6791_s21, %s6848_s3 }
 0x209   : > { %p5183_p11 = scmp.lt.s32.totalorder %s5181_s5, %s5177_s29 }
 0x20a   : > { %p5179_p7 = pnand %p5178_p6, %p5304_p4 }
 0x20b   : > { %p5184_p12 = por %p5183_p11, %p5182_p10 }
 0x20c   : > { %p5180_p9 = pneg %p5179_p7 }
 0x20e   : > { %p5185_p13 = pnand %p5184_p12, %p5180_p9 }
 0x210   : > { %5188 = shalt.err (!%p5185_p13)
}
 0x211   : > { %s5242_s8 = smov 128   ;;  %s5243_s9 = smov 8  }
 0x212   : > { %5106 = dma.vmem_to_hbm [thread:$0]  (%p5304_p4), %s6793_s11, 4096, %s6791_s21, %s6800_s15, %s5242_s8, %s5242_s8, %s5243_s9  }
 0x213 PF: > { %p5112_p0 = scmp.ge.s32.totalorder %s5239_s17, 2  ;;  %s3768_s10 = sand.u32 1, %s5219_s12  }
 0x214   : > { %s3769_s18 = scalar_lea.sflag [#allocation3], %s3768_s10 }
 0x215   : > { %p5109_p1 = pnand %p5112_p0, %p5311_p8 }
 0x217   : > { %p5110_p2 = pneg %p5109_p1 }
 0x219   : > { %5214 = dma.done.wait (%p5110_p2), %s3769_s18, 4096  }
 0x21a   : > { %5216 = vsyncadd (%p5110_p2), %s3769_s18, 4294963200  ;;  %s16_s17 = sadd.s32 1, %s5239_s17   ;;  %s7079_s12 = smov %s5223_s13 }
 0x21b   : > { %p13_p3 = scmp.ge.s32.totalorder %s16_s17, 4   ;;  %s7080_s13 = smov %s5227_s14 }
 0x21c   : > { %s7081_s14 = smov %s5317_s25  ;;  %s7082_s15 = smov %s5235_s16 }
 0x21d   : > { %s7083_s16 = smov %s7085_s20  ;;  %15 = sbr.rel (!%p13_p3) target bundleno = 4 (0x4), region = 83 }
 0x222   :  { %3774 = vsyncpa [#allocation3], 1 }
 0x223   :  { %3776 = vsyncpa [#allocation3 + $0x1], 1 }

</bundles_post_ra>
